<compile_context>
chip_gen: v6e
topology: v6e:2x2x1
jax: 0.10.0
libtpu: 0.0.40
codegen_flags: <defaults>
</compile_context>

<pallas_src>
import jax
import jax.numpy as jnp
from jax.experimental import pallas as pl
from jax.experimental.pallas import tpu as pltpu


def _round_up(n, m):
    return ((n + m - 1) // m) * m


def mlp_kernel(x_ref,
               w1_ref, b1_ref,
               w2_ref, b2_ref,
               w3_ref, b3_ref,
               w4_ref, b4_ref,
               w5_ref, b5_ref,
               o_ref):
    # x tile arrives as f32 (natural last dim D, no K padding); cast in VMEM.
    x = x_ref[...].astype(jnp.bfloat16)                                  # (TM, D)

    # l1 (D -> 256): MXU bf16 operands, f32 accumulate, +bias, ReLU.
    h = jnp.dot(x, w1_ref[...], preferred_element_type=jnp.float32) + b1_ref[...]
    h = jnp.maximum(h, 0.0).astype(jnp.bfloat16)

    # l6 (256 -> 128)
    h = jnp.dot(h, w2_ref[...], preferred_element_type=jnp.float32) + b2_ref[...]
    h = jnp.maximum(h, 0.0).astype(jnp.bfloat16)

    # l7 (128 -> 64)
    h = jnp.dot(h, w3_ref[...], preferred_element_type=jnp.float32) + b3_ref[...]
    h = jnp.maximum(h, 0.0)                                              # (TM, 64) f32

    # l8 (64 -> 2): VPU broadcast-multiply + XLU lane reduction (a 2-wide MXU
    # output would waste >99% of the systolic array).
    c0 = jnp.sum(h * w4_ref[0:1, :], axis=-1, keepdims=True) + b4_ref[0]
    c1 = jnp.sum(h * w4_ref[1:2, :], axis=-1, keepdims=True) + b4_ref[1]
    c0 = jnp.maximum(c0, 0.0)
    c1 = jnp.maximum(c1, 0.0)

    # l9 (2 -> 1) + exact sigmoid (EUP exp, exact divide).
    z = c0 * w5_ref[0] + c1 * w5_ref[1] + b5_ref[0]                      # (TM, 1)
    sig = 1.0 / (1.0 + jnp.exp(-z))                                      # (TM, 1) f32

    # Pack the (TM, 1) column into the lane-dense (TM//128, 128) output block:
    # out[g, l] = sig[g*128 + l, 0].  Done with an eye-mask multiply + sublane
    # reduction — only broadcast / multiply / reduce, all natively supported.
    g_blocks, lanes = o_ref.shape                                        # (TM//128, 128)
    rows = jax.lax.broadcasted_iota(jnp.int32, (lanes, lanes), 0)
    cols = jax.lax.broadcasted_iota(jnp.int32, (lanes, lanes), 1)
    eye = (rows == cols).astype(jnp.float32)                             # (128, 128)
    for g in range(g_blocks):                                            # static unroll
        chunk = sig[g * lanes:(g + 1) * lanes, :]                        # (128, 1)
        o_ref[g, :] = jnp.sum(chunk * eye, axis=0)                       # (128,) lane-major


def prepare_params(params):
    """One-time preprocessing of the 5 (w, b) pairs into kernel-ready arrays.

    Call once (outside the inference loop); the result is passed unchanged to
    every neural_net_forward call so no per-call cast/transpose HLOs are issued.
    """
    (w1, b1), (w2, b2), (w3, b3), (w4, b4), (w5, b5) = params
    return (
        w1.astype(jnp.bfloat16),                    # (D, 256)  MXU operand
        b1.reshape(1, -1).astype(jnp.float32),      # (1, 256)
        w2.astype(jnp.bfloat16),                    # (256, 128)
        b2.reshape(1, -1).astype(jnp.float32),      # (1, 128)
        w3.astype(jnp.bfloat16),                    # (128, 64)
        b3.reshape(1, -1).astype(jnp.float32),      # (1, 64)
        w4.T.astype(jnp.float32),                   # (2, 64)   lane-contiguous rows
        b4.reshape(-1).astype(jnp.float32),         # (2,)      SMEM
        w5.reshape(-1).astype(jnp.float32),         # (2,)      SMEM
        b5.reshape(-1).astype(jnp.float32),         # (1,)      SMEM
    )


def _pick_tile(batch, tm):
    """Batch tile: multiple of 128 (lane-packed output), large enough to amortize
    per-step overhead, capped so the grid has >= 2 steps when the batch allows."""
    b128 = _round_up(batch, 128)
    tm = _round_up(max(int(tm), 128), 128)
    tm = min(tm, b128)                       # don't over-pad tiny batches
    if b128 >= 256:                          # keep >= 2 grid steps (v7x megacore)
        tm = min(tm, _round_up((b128 + 1) // 2, 128))
    b_pad = _round_up(b128, tm)
    return tm, b_pad


def neural_net_forward(x, prepared_params, *, tm=1024):
    """Forward pass of NeuralNet.

    x: (B, D) float32.
    prepared_params: output of prepare_params(params).
    Returns (B, 1) float32.
    """
    (w1_p, b1_r, w2_c, b2_r, w3_c, b3_r, w4_r, b4_r, w5_r, b5_r) = prepared_params
    B, D = x.shape
    tm, b_pad = _pick_tile(B, tm)

    # Only the batch axis is padded (to a multiple of tm); padded rows produce
    # finite garbage that is sliced away below.
    if b_pad == B:
        x_p = x
    else:
        x_p = jnp.zeros((b_pad, D), x.dtype).at[:B, :].set(x)

    n1, n2, n3 = w1_p.shape[1], w2_c.shape[1], w3_c.shape[1]

    resident = lambda i: (0, 0)              # weights/biases: same block every step
    smem = pl.BlockSpec(memory_space=pltpu.MemorySpace.SMEM)

    param_bytes = sum(int(a.size) * a.dtype.itemsize for a in prepared_params)
    cost = pl.CostEstimate(
        flops=2 * b_pad * (D * n1 + n1 * n2 + n2 * n3 + n3 * 2 + 2),
        transcendentals=b_pad,
        bytes_accessed=int(x_p.size) * x_p.dtype.itemsize + param_bytes + b_pad * 4,
    )

    out = pl.pallas_call(
        mlp_kernel,
        out_shape=jax.ShapeDtypeStruct((b_pad // 128, 128), jnp.float32),
        grid=(b_pad // tm,),
        in_specs=[
            pl.BlockSpec((tm, D), lambda i: (i, 0)),       # x (pipelined over batch)
            pl.BlockSpec((D, n1), resident),               # w1
            pl.BlockSpec((1, n1), resident),               # b1
            pl.BlockSpec((n1, n2), resident),              # w2
            pl.BlockSpec((1, n2), resident),               # b2
            pl.BlockSpec((n2, n3), resident),              # w3
            pl.BlockSpec((1, n3), resident),               # b3
            pl.BlockSpec((2, n3), resident),               # w4 rows (VPU layer)
            smem,                                          # b4 (2,)
            smem,                                          # w5 (2,)
            smem,                                          # b5 (1,)
        ],
        out_specs=pl.BlockSpec((tm // 128, 128), lambda i: (i, 0)),
        compiler_params=pltpu.CompilerParams(
            dimension_semantics=("parallel",),
            vmem_limit_bytes=32 * 1024 * 1024,
        ),
        cost_estimate=cost,
    )(x_p, w1_p, b1_r, w2_c, b2_r, w3_c, b3_r, w4_r, b4_r, w5_r, b5_r)

    # Lane-packed (b_pad//128, 128) -> (B, 1); row-major order matches batch order.
    return out.reshape(-1)[:B].reshape(B, 1)


def init_params(key, in_dim):
    """Deterministic PyTorch-Linear-style init (uniform +/- 1/sqrt(fan_in)).

    Weights stored transposed as (in, out) so the forward is x @ W + b.
    """
    dims = [(in_dim, 256), (256, 128), (128, 64), (64, 2), (2, 1)]
    params = []
    for fan_in, fan_out in dims:
        key, kw, kb = jax.random.split(key, 3)
        bound = 1.0 / jnp.sqrt(fan_in)
        w = jax.random.uniform(kw, (fan_in, fan_out), jnp.float32, -bound, bound)
        b = jax.random.uniform(kb, (fan_out,), jnp.float32, -bound, bound)
        params.append((w, b))
    return params


def reference_forward(x, params):
    h = x
    for i, (w, b) in enumerate(params):
        h = h @ w + b
        h = jnp.maximum(h, 0.0) if i < len(params) - 1 else jax.nn.sigmoid(h)
    return h


if __name__ == "__main__":
    key = jax.random.PRNGKey(0)
    in_dim = 32   # stands in for len(X_train[0])
    batch = 8

    k_x, k_p = jax.random.split(key)
    x = jax.random.normal(k_x, (batch, in_dim), jnp.float32)
    params = init_params(k_p, in_dim)

    prepared = prepare_params(params)          # one-time weight preprocessing
    out = neural_net_forward(x, prepared)
    out = jax.block_until_ready(out)

    ref = reference_forward(x, params)
    assert out.shape == (batch, 1)
    # bf16 MXU operands -> slightly loosened tolerance vs f32 reference.
    assert jnp.allclose(out, ref, atol=2e-2, rtol=0.0), (out, ref)

    print("KERNEL_OK")
</pallas_src>

<mosaic_0001>
module attributes {stable_mosaic.version = 11 : i64} {
  func.func @mlp_kernel(%arg0: i32, %arg1: memref<128x32xf32, #tpu.memory_space<vmem>>, %arg2: memref<32x256xbf16, #tpu.memory_space<vmem>>, %arg3: memref<1x256xf32, #tpu.memory_space<vmem>>, %arg4: memref<256x128xbf16, #tpu.memory_space<vmem>>, %arg5: memref<1x128xf32, #tpu.memory_space<vmem>>, %arg6: memref<128x64xbf16, #tpu.memory_space<vmem>>, %arg7: memref<1x64xf32, #tpu.memory_space<vmem>>, %arg8: memref<2x64xf32, #tpu.memory_space<vmem>>, %arg9: memref<2xf32, #tpu.memory_space<smem>>, %arg10: memref<2xf32, #tpu.memory_space<smem>>, %arg11: memref<1xf32, #tpu.memory_space<smem>>, %arg12: memref<1x128xf32, #tpu.memory_space<vmem>>) attributes {dimension_semantics = [#tpu.dimension_semantics<parallel>], iteration_bounds = array<i64: 1>, scalar_prefetch = 0 : i64, scratch_operands = 0 : i64, tpu.core_type = #tpu.core_type<tc>, window_params = [{transform_indices = @transform_0, window_bounds = array<i64: 128, 32>}, {pipeline_mode = #tpu.pipeline_mode<synchronous>, transform_indices = @transform_1, window_bounds = array<i64: 32, 256>}, {pipeline_mode = #tpu.pipeline_mode<synchronous>, transform_indices = @transform_2, window_bounds = array<i64: 1, 256>}, {pipeline_mode = #tpu.pipeline_mode<synchronous>, transform_indices = @transform_3, window_bounds = array<i64: 256, 128>}, {pipeline_mode = #tpu.pipeline_mode<synchronous>, transform_indices = @transform_4, window_bounds = array<i64: 1, 128>}, {pipeline_mode = #tpu.pipeline_mode<synchronous>, transform_indices = @transform_5, window_bounds = array<i64: 128, 64>}, {pipeline_mode = #tpu.pipeline_mode<synchronous>, transform_indices = @transform_6, window_bounds = array<i64: 1, 64>}, {pipeline_mode = #tpu.pipeline_mode<synchronous>, transform_indices = @transform_7, window_bounds = array<i64: 2, 64>}, {transform_indices = @transform_8, window_bounds = array<i64: 2>}, {transform_indices = @transform_9, window_bounds = array<i64: 2>}, {transform_indices = @transform_10, window_bounds = array<i64: 1>}, {transform_indices = @transform_11, window_bounds = array<i64: 1, 128>}]} {
    %c0 = arith.constant 0 : index
    %c0_0 = arith.constant 0 : index
    %0 = vector.load %arg1[%c0, %c0_0] : memref<128x32xf32, #tpu.memory_space<vmem>>, vector<128x32xf32>
    %1 = arith.truncf %0 : vector<128x32xf32> to vector<128x32xbf16>
    %c0_1 = arith.constant 0 : index
    %c0_2 = arith.constant 0 : index
    %2 = vector.load %arg2[%c0_1, %c0_2] : memref<32x256xbf16, #tpu.memory_space<vmem>>, vector<32x256xbf16>
    %cst = arith.constant dense<0.000000e+00> : vector<128x256xf32>
    %3 = tpu.matmul %1, %2, %cst {dimension_numbers = #tpu.dot_dimension_numbers<[1], [0], [0], [1], [0, 0, 1, 1], [], []>} : vector<128x32xbf16>, vector<32x256xbf16>, vector<128x256xf32> -> vector<128x256xf32>
    %c0_3 = arith.constant 0 : index
    %c0_4 = arith.constant 0 : index
    %4 = vector.load %arg3[%c0_3, %c0_4] : memref<1x256xf32, #tpu.memory_space<vmem>>, vector<1x256xf32>
    %5 = vector.broadcast %4 : vector<1x256xf32> to vector<128x256xf32>
    %6 = arith.addf %3, %5 : vector<128x256xf32>
    %cst_5 = arith.constant 0.000000e+00 : f32
    %7 = vector.broadcast %cst_5 : f32 to vector<128x256xf32>
    %8 = arith.maximumf %6, %7 : vector<128x256xf32>
    %9 = arith.truncf %8 : vector<128x256xf32> to vector<128x256xbf16>
    %c0_6 = arith.constant 0 : index
    %c0_7 = arith.constant 0 : index
    %10 = vector.load %arg4[%c0_6, %c0_7] : memref<256x128xbf16, #tpu.memory_space<vmem>>, vector<256x128xbf16>
    %cst_8 = arith.constant dense<0.000000e+00> : vector<128x128xf32>
    %11 = tpu.matmul %9, %10, %cst_8 {dimension_numbers = #tpu.dot_dimension_numbers<[1], [0], [0], [1], [0, 0, 1, 1], [], []>} : vector<128x256xbf16>, vector<256x128xbf16>, vector<128x128xf32> -> vector<128x128xf32>
    %c0_9 = arith.constant 0 : index
    %c0_10 = arith.constant 0 : index
    %12 = vector.load %arg5[%c0_9, %c0_10] : memref<1x128xf32, #tpu.memory_space<vmem>>, vector<1x128xf32>
    %13 = vector.broadcast %12 : vector<1x128xf32> to vector<128x128xf32>
    %14 = arith.addf %11, %13 : vector<128x128xf32>
    %cst_11 = arith.constant 0.000000e+00 : f32
    %15 = vector.broadcast %cst_11 : f32 to vector<128x128xf32>
    %16 = arith.maximumf %14, %15 : vector<128x128xf32>
    %17 = arith.truncf %16 : vector<128x128xf32> to vector<128x128xbf16>
    %c0_12 = arith.constant 0 : index
    %c0_13 = arith.constant 0 : index
    %18 = vector.load %arg6[%c0_12, %c0_13] : memref<128x64xbf16, #tpu.memory_space<vmem>>, vector<128x64xbf16>
    %cst_14 = arith.constant dense<0.000000e+00> : vector<128x64xf32>
    %19 = tpu.matmul %17, %18, %cst_14 {dimension_numbers = #tpu.dot_dimension_numbers<[1], [0], [0], [1], [0, 0, 1, 1], [], []>} : vector<128x128xbf16>, vector<128x64xbf16>, vector<128x64xf32> -> vector<128x64xf32>
    %c0_15 = arith.constant 0 : index
    %c0_16 = arith.constant 0 : index
    %20 = vector.load %arg7[%c0_15, %c0_16] : memref<1x64xf32, #tpu.memory_space<vmem>>, vector<1x64xf32>
    %21 = vector.broadcast %20 : vector<1x64xf32> to vector<128x64xf32>
    %22 = arith.addf %19, %21 : vector<128x64xf32>
    %cst_17 = arith.constant 0.000000e+00 : f32
    %23 = vector.broadcast %cst_17 : f32 to vector<128x64xf32>
    %24 = arith.maximumf %22, %23 : vector<128x64xf32>
    %c0_18 = arith.constant 0 : index
    %c0_19 = arith.constant 0 : index
    %25 = vector.load %arg8[%c0_18, %c0_19] : memref<2x64xf32, #tpu.memory_space<vmem>>, vector<1x64xf32>
    %26 = vector.broadcast %25 : vector<1x64xf32> to vector<128x64xf32>
    %27 = arith.mulf %24, %26 : vector<128x64xf32>
    %cst_20 = arith.constant dense<0.000000e+00> : vector<128xf32>
    %28 = vector.multi_reduction <add>, %27, %cst_20 [1] : vector<128x64xf32> to vector<128xf32>
    %29 = vector.shape_cast %28 : vector<128xf32> to vector<128x1xf32>
    %c0_21 = arith.constant 0 : index
    %30 = memref.load %arg9[%c0_21] : memref<2xf32, #tpu.memory_space<smem>>
    %31 = vector.broadcast %30 : f32 to vector<128x1xf32>
    %32 = arith.addf %29, %31 : vector<128x1xf32>
    %c1 = arith.constant 1 : index
    %c0_22 = arith.constant 0 : index
    %33 = vector.load %arg8[%c1, %c0_22] : memref<2x64xf32, #tpu.memory_space<vmem>>, vector<1x64xf32>
    %34 = vector.broadcast %33 : vector<1x64xf32> to vector<128x64xf32>
    %35 = arith.mulf %24, %34 : vector<128x64xf32>
    %cst_23 = arith.constant dense<0.000000e+00> : vector<128xf32>
    %36 = vector.multi_reduction <add>, %35, %cst_23 [1] : vector<128x64xf32> to vector<128xf32>
    %37 = vector.shape_cast %36 : vector<128xf32> to vector<128x1xf32>
    %c1_24 = arith.constant 1 : index
    %38 = memref.load %arg9[%c1_24] : memref<2xf32, #tpu.memory_space<smem>>
    %39 = vector.broadcast %38 : f32 to vector<128x1xf32>
    %40 = arith.addf %37, %39 : vector<128x1xf32>
    %cst_25 = arith.constant 0.000000e+00 : f32
    %41 = vector.broadcast %cst_25 : f32 to vector<128x1xf32>
    %42 = arith.maximumf %32, %41 : vector<128x1xf32>
    %cst_26 = arith.constant 0.000000e+00 : f32
    %43 = vector.broadcast %cst_26 : f32 to vector<128x1xf32>
    %44 = arith.maximumf %40, %43 : vector<128x1xf32>
    %c0_27 = arith.constant 0 : index
    %45 = memref.load %arg10[%c0_27] : memref<2xf32, #tpu.memory_space<smem>>
    %46 = vector.broadcast %45 : f32 to vector<128x1xf32>
    %47 = arith.mulf %42, %46 : vector<128x1xf32>
    %c1_28 = arith.constant 1 : index
    %48 = memref.load %arg10[%c1_28] : memref<2xf32, #tpu.memory_space<smem>>
    %49 = vector.broadcast %48 : f32 to vector<128x1xf32>
    %50 = arith.mulf %44, %49 : vector<128x1xf32>
    %51 = arith.addf %47, %50 : vector<128x1xf32>
    %c0_29 = arith.constant 0 : index
    %52 = memref.load %arg11[%c0_29] : memref<1xf32, #tpu.memory_space<smem>>
    %53 = vector.broadcast %52 : f32 to vector<128x1xf32>
    %54 = arith.addf %51, %53 : vector<128x1xf32>
    %cst_30 = arith.constant 0.000000e+00 : f32
    %55 = vector.broadcast %cst_30 : f32 to vector<128x1xf32>
    %56 = arith.subf %55, %54 : vector<128x1xf32>
    %57 = math.exp %56 : vector<128x1xf32>
    %cst_31 = arith.constant 1.000000e+00 : f32
    %58 = vector.broadcast %cst_31 : f32 to vector<128x1xf32>
    %59 = arith.addf %58, %57 : vector<128x1xf32>
    %cst_32 = arith.constant 1.000000e+00 : f32
    %60 = vector.broadcast %cst_32 : f32 to vector<128x1xf32>
    %61 = arith.divf %60, %59 : vector<128x1xf32>
    %62 = tpu.iota {dimensions = array<i32: 0>} : vector<128x128xi32>
    %63 = tpu.iota {dimensions = array<i32: 1>} : vector<128x128xi32>
    %64 = arith.cmpi eq, %62, %63 : vector<128x128xi32>
    %65 = arith.extui %64 : vector<128x128xi1> to vector<128x128xi32>
    %66 = arith.sitofp %65 : vector<128x128xi32> to vector<128x128xf32>
    %67 = vector.broadcast %61 : vector<128x1xf32> to vector<128x128xf32>
    %68 = arith.mulf %67, %66 : vector<128x128xf32>
    %cst_33 = arith.constant dense<0.000000e+00> : vector<128xf32>
    %69 = vector.multi_reduction <add>, %68, %cst_33 [0] : vector<128x128xf32> to vector<128xf32>
    %c0_34 = arith.constant 0 : index
    %c0_35 = arith.constant 0 : index
    %70 = vector.load %arg12[%c0_34, %c0_35] : memref<1x128xf32, #tpu.memory_space<vmem>>, vector<1x128xf32>
    %71 = vector.shape_cast %70 : vector<1x128xf32> to vector<128xf32>
    %72 = vector.shape_cast %69 : vector<128xf32> to vector<1x128xf32>
    tpu.vector_store %arg12[%c0_34, %c0_35], %72 {strides = array<i32>} : memref<1x128xf32, #tpu.memory_space<vmem>>, vector<1x128xf32>,
    return
  }
  func.func @transform_0(%arg0: i32) -> (i32, i32) {
    %c0_i32 = arith.constant 0 : i32
    %c0_i32_0 = arith.constant 0 : i32
    return %arg0, %c0_i32 : i32, i32
  }
  func.func @transform_1(%arg0: i32) -> (i32, i32) {
    %c0_i32 = arith.constant 0 : i32
    %c0_i32_0 = arith.constant 0 : i32
    %c0_i32_1 = arith.constant 0 : i32
    return %c0_i32, %c0_i32_0 : i32, i32
  }
  func.func @transform_2(%arg0: i32) -> (i32, i32) {
    %c0_i32 = arith.constant 0 : i32
    %c0_i32_0 = arith.constant 0 : i32
    %c0_i32_1 = arith.constant 0 : i32
    return %c0_i32, %c0_i32_0 : i32, i32
  }
  func.func @transform_3(%arg0: i32) -> (i32, i32) {
    %c0_i32 = arith.constant 0 : i32
    %c0_i32_0 = arith.constant 0 : i32
    %c0_i32_1 = arith.constant 0 : i32
    return %c0_i32, %c0_i32_0 : i32, i32
  }
  func.func @transform_4(%arg0: i32) -> (i32, i32) {
    %c0_i32 = arith.constant 0 : i32
    %c0_i32_0 = arith.constant 0 : i32
    %c0_i32_1 = arith.constant 0 : i32
    return %c0_i32, %c0_i32_0 : i32, i32
  }
  func.func @transform_5(%arg0: i32) -> (i32, i32) {
    %c0_i32 = arith.constant 0 : i32
    %c0_i32_0 = arith.constant 0 : i32
    %c0_i32_1 = arith.constant 0 : i32
    return %c0_i32, %c0_i32_0 : i32, i32
  }
  func.func @transform_6(%arg0: i32) -> (i32, i32) {
    %c0_i32 = arith.constant 0 : i32
    %c0_i32_0 = arith.constant 0 : i32
    %c0_i32_1 = arith.constant 0 : i32
    return %c0_i32, %c0_i32_0 : i32, i32
  }
  func.func @transform_7(%arg0: i32) -> (i32, i32) {
    %c0_i32 = arith.constant 0 : i32
    %c0_i32_0 = arith.constant 0 : i32
    %c0_i32_1 = arith.constant 0 : i32
    return %c0_i32, %c0_i32_0 : i32, i32
  }
  func.func @transform_8(%arg0: i32) -> i32 {
    %c0_i32 = arith.constant 0 : i32
    %c0_i32_0 = arith.constant 0 : i32
    return %c0_i32 : i32
  }
  func.func @transform_9(%arg0: i32) -> i32 {
    %c0_i32 = arith.constant 0 : i32
    %c0_i32_0 = arith.constant 0 : i32
    return %c0_i32 : i32
  }
  func.func @transform_10(%arg0: i32) -> i32 {
    %c0_i32 = arith.constant 0 : i32
    %c0_i32_0 = arith.constant 0 : i32
    return %c0_i32 : i32
  }
  func.func @transform_11(%arg0: i32) -> (i32, i32) {
    %c0_i32 = arith.constant 0 : i32
    %c0_i32_0 = arith.constant 0 : i32
    return %arg0, %c0_i32 : i32, i32
  }
}

</mosaic_0001>

<bundles_post_ra>
// kernel: tpu_custom_call.1
= control target key start
LH: loop header
LB: loop body
LE: loop exit
PB: predicated region body
PF: predicated region fallthrough
CT: control target
= control target key end

     0   :  { %17 = vsyncpa [#allocation5], 0  ;;  %s2108_s0 = inlined_call_operand.vmem [shape: f32[128,32], index: 0, kind: input, shape index: {}]   ;;  %s2109_s1 = inlined_call_operand.vmem [shape: bf16[32,256], index: 1, kind: input, shape index: {}]   ;;  %s2110_s2 = inlined_call_operand.vmem [shape: f32[1,256], index: 2, kind: input, shape index: {}]   ;;  %s2111_s3 = inlined_call_operand.vmem [shape: bf16[256,128], index: 3, kind: input, shape index: {}]   ;;  %s2112_s4 = inlined_call_operand.vmem [shape: f32[1,128], index: 4, kind: input, shape index: {}]   ;;  %s2113_s5 = inlined_call_operand.vmem [shape: bf16[128,64], index: 5, kind: input, shape index: {}]   ;;  %s2114_s6 = inlined_call_operand.vmem [shape: f32[1,64], index: 6, kind: input, shape index: {}]   ;;  %s2115_s7 = inlined_call_operand.vmem [shape: f32[2,64], index: 7, kind: input, shape index: {}]   ;;  %s2116_s8 = inlined_call_operand.vmem [shape: f32[2], index: 8, kind: input, shape index: {}]   ;;  %s2117_s9 = inlined_call_operand.vmem [shape: f32[2], index: 9, kind: input, shape index: {}]   ;;  %s2118_s10 = inlined_call_operand.<no memory space> [shape: f32[1], index: 10, kind: input, shape index: {}]   ;;  %s2119_s11 = inlined_call_operand.hbm [shape: f32[1,128], index: 11, kind: output, shape index: {}]  }
   0x1   :  { %18 = vsyncpa [#allocation7], 0 }
   0x2   :  { %19 = vsyncpa [#allocation4], 0  ;;  %s42_s19 = sshll.u32 %s2116_s8, 4  ;;  %s52_s22 = sshll.u32 %s2117_s9, 4  ;;  %s43_s19 = int_to_ptr.vmem [resolvable:$true] %s42_s19  ;;  %s53_s22 = int_to_ptr.vmem [resolvable:$true] %s52_s22 }
   0x3   :  { %s1515_s23 = scalar_lea.vmem %s43_s19, 16  ;;  %p1520_p1 = scmp.lt.s32.totalorder %s43_s19, %s43_s19 }
   0x4   :  { %p1516_p0 = scmp.ne.s32.totalorder %s43_s19, %s1515_s23  ;;  %p1521_p2 = scmp.lt.s32.totalorder %s1515_s23, %s1515_s23 }
   0x6   :  { %p1522_p3 = por %p1521_p2, %p1520_p1 }
   0x8   :  { %p1523_p4 = pnand %p1522_p3, %p1516_p0 }
   0xa   :  { %1526 = shalt.err (!%p1523_p4)
}
   0xb   :  { %s1565_s24 = smov [#allocation3]   ;;  %s1527_s25 = scalar_lea.vmem %s53_s22, 16 }
   0xc   :  { %45 = dma.vmem_to_smem %s43_s19, 16, %s1565_s24, [#allocation5]  }
   0xd   :  { %p1528_p5 = scmp.ne.s32.totalorder %s53_s22, %s1527_s25  ;;  %p1532_p6 = scmp.lt.s32.totalorder %s53_s22, %s53_s22 }
   0xe   :  { %p1533_p7 = scmp.lt.s32.totalorder %s1527_s25, %s1527_s25 }
  0x10   :  { %p1534_p8 = por %p1533_p7, %p1532_p6 }
  0x12   :  { %p1535_p9 = pnand %p1534_p8, %p1528_p5 }
  0x14   :  { %1538 = shalt.err (!%p1535_p9)
}
  0x15   :  { %s1566_s8 = smov [#allocation6]  }
  0x16   :  { %55 = dma.vmem_to_smem %s53_s22, 16, %s1566_s8, [#allocation7]  }
  0x17   :  { %1559 = dma.done.wait [#allocation5], 16  }
  0x18   :  { %1560 = vsyncadd [#allocation5], 4294967280 }
  0x19   :  { %1561 = dma.done.wait [#allocation7], 16  }
  0x1a   :  { %1562 = vsyncadd [#allocation7], 4294967280 }
  0x1b   :  { %64 = sfence }
  0x1c   :  { %v1421_v0 = vld [vmem:[%s2109_s1 + $0x14] ss:$8 sps:$4 sm:$0xff]   ;;  %v1423_v1 = vld [vmem:[%s2109_s1 + $0x10] ss:$8 sps:$4 sm:$0xff]   ;;  %v1567_v2 = vmov 0   ;;  %v66_v5 = vld [vmem:[%s2108_s0] sm:$0xff]  ;;  %v96_v51 = vlaneseq }
  0x1d   :  { %183 = vmatprep.mubr.bf16.mxu0 %v1567_v2  ;;  %163 = vmatprep.subr.bf16.mxu0 %v1421_v0  ;;  %v1424_v3 = vld [vmem:[%s2109_s1 + $0x4] ss:$8 sps:$4 sm:$0xff]   ;;  %v1426_v4 = vld [vmem:[%s2109_s1] ss:$8 sps:$4 sm:$0xff]   ;;  %vm126_vm0 = vcmask 261120   ;;  %v1427_v8 = vld [vmem:[%s2111_s3 + $0x78] sm:$0xff]  }
  0x1e   :  { %164 = vmatpush1.bf16.msra.mxu0 %v1423_v1  ;;  %v67_v6 = vld [vmem:[%s2108_s0 + $0x8] sm:$0xff]  ;;  %v68_v9 = vld [vmem:[%s2108_s0 + $0x10] sm:$0xff]  ;;  %v69_v10 = vld [vmem:[%s2108_s0 + $0x18] sm:$0xff]  ;;  %1304 = vmatprep.subr.bf16.mxu1 %v1427_v8  ;;  %v1779_v52 = vshrl.u32 %v96_v51, 7  ;;  %vm773_vm1 = vcmask 523264   ;;  %s1287_s29 = sld [smem:[#allocation6 + $0x1]] }
  0x1f   :  { %165 = vmatprep.subr.bf16.mxu0 %v1424_v3  ;;  %v82_v7 = vpack.c.bf16 %v67_v6, %v66_v5  ;;  %v1428_v11 = vld [vmem:[%s2111_s3 + $0x38] sm:$0xff]   ;;  %v1429_v12 = vld [vmem:[%s2111_s3 + $0x70] sm:$0xff]   ;;  %v1431_v14 = vld [vmem:[%s2111_s3 + $0x68] sm:$0xff]   ;;  %v83_v15 = vpack.c.bf16 %v69_v10, %v68_v9  ;;  %s959_s30 = sld [smem:[#allocation6]] }
  0x20   :  { %1305 = vmatpush3.bf16.msra.mxu1 %v1428_v11  ;;  %v1430_v13 = vld [vmem:[%s2111_s3 + $0x30] sm:$0xff]   ;;  %v1432_v16 = vld [vmem:[%s2111_s3 + $0x28] sm:$0xff]   ;;  %v1433_v17 = vld [vmem:[%s2111_s3 + $0x60] sm:$0xff]   ;;  %v102_v53 = vsub.s32 1, %v1779_v52  ;;  %v98_v54 = vsub.s32 0, %v1779_v52 }
  0x21   :  { %1306 = vmatprep.subr.bf16.mxu1 %v1429_v12  ;;  %v70_v18 = vld [vmem:[%s2108_s0 + $0x20] sm:$0xff]  ;;  %v71_v19 = vld [vmem:[%s2108_s0 + $0x28] sm:$0xff]  ;;  %v1435_v21 = vld [vmem:[%s2111_s3 + $0x58] sm:$0xff]  }
  0x22   :  { %166 = vmatpush1.bf16.msra.mxu0 %v1426_v4  ;;  %v1434_v20 = vld [vmem:[%s2111_s3 + $0x20] sm:$0xff]   ;;  %v1436_v22 = vld [vmem:[%s2111_s3 + $0x18] sm:$0xff]   ;;  %v84_v23 = vpack.c.bf16 %v71_v19, %v70_v18  ;;  %v72_v24 = vld [vmem:[%s2108_s0 + $0x30] sm:$0xff] }
  0x23   :  { %v73_v25 = vld [vmem:[%s2108_s0 + $0x38] sm:$0xff]  ;;  %v74_v27 = vld [vmem:[%s2108_s0 + $0x40] sm:$0xff]  ;;  %v75_v28 = vld [vmem:[%s2108_s0 + $0x48] sm:$0xff] }
  0x24   :  { %1307 = vmatpush3.bf16.msra.mxu1 %v1430_v13  ;;  %v85_v26 = vpack.c.bf16 %v73_v25, %v72_v24  ;;  %v86_v29 = vpack.c.bf16 %v75_v28, %v74_v27  ;;  %v76_v30 = vld [vmem:[%s2108_s0 + $0x50] sm:$0xff]  ;;  %v77_v31 = vld [vmem:[%s2108_s0 + $0x58] sm:$0xff]  ;;  %v78_v33 = vld [vmem:[%s2108_s0 + $0x60] sm:$0xff] }
  0x25   :  { %1250 = vmatmul.mubr.msk.bf16.vlgmr.msra.gmra.mxu0 %vm126_vm0, %v82_v7  ;;  %1308 = vmatprep.subr.bf16.mxu1 %v1431_v14  ;;  %v87_v32 = vpack.c.bf16 %v77_v31, %v76_v30  ;;  %v79_v34 = vld [vmem:[%s2108_s0 + $0x68] sm:$0xff]  ;;  %v80_v36 = vld [vmem:[%s2108_s0 + $0x70] sm:$0xff]  ;;  %v81_v37 = vld [vmem:[%s2108_s0 + $0x78] sm:$0xff] }
  0x26   :  { %193 = vmatprep.mubr.bf16.mxu0 %v1567_v2  ;;  %v88_v35 = vpack.c.bf16 %v79_v34, %v78_v33  ;;  %v89_v38 = vpack.c.bf16 %v81_v37, %v80_v36  ;;  %v1437_v39 = vld [vmem:[%s2111_s3 + $0x50] sm:$0xff]   ;;  %v1439_v41 = vld [vmem:[%s2111_s3 + $0x48] sm:$0xff]   ;;  %v1441_v43 = vld [vmem:[%s2111_s3 + $0x40] sm:$0xff]  }
  0x27   :  { %v1438_v40 = vld [vmem:[%s2111_s3 + $0x10] sm:$0xff]   ;;  %v1440_v42 = vld [vmem:[%s2111_s3 + $0x8] sm:$0xff]   ;;  %v1442_v44 = vld [vmem:[%s2111_s3] sm:$0xff]  }
  0x28   :  { %1309 = vmatpush3.bf16.msra.mxu1 %v1432_v16  ;;  %v1443_v45 = vld [vmem:[%s2113_s5 + $0x38] sm:$0xff]   ;;  %v1444_v46 = vld [vmem:[%s2113_s5 + $0x30] sm:$0xff]   ;;  %v1445_v47 = vld [vmem:[%s2113_s5 + $0x28] sm:$0xff]  }
  0x29   :  { %1310 = vmatprep.subr.bf16.mxu1 %v1433_v17  ;;  %1384 = vmatprep.subr.bf16.mxu0 %v1443_v45  ;;  %v1446_v48 = vld [vmem:[%s2113_s5 + $0x20] sm:$0xff]   ;;  %v1447_v49 = vld [vmem:[%s2113_s5 + $0x18] sm:$0xff]   ;;  %v1448_v50 = vld [vmem:[%s2113_s5 + $0x10] sm:$0xff]  }
  0x2a   :  { %1385 = vmatpush3.bf16.msra.mxu0 %v1443_v45  ;;  %v94_v55 = vld [vmem:[%s2110_s2] sm:$0x3] }
  0x2b   :  { %1386 = vmatprep.subr.bf16.mxu0 %v1444_v46  ;;  %v1786_v57 = vrot.slane %v94_v55, %v102_v53  ;;  %v1788_v58 = vrot.slane %v94_v55, %v98_v54 }
  0x2c   :  { %1311 = vmatpush3.bf16.msra.mxu1 %v1434_v20 }
  0x2d   :  { %1251 = vmatmul.mubr.msk.bf16.gmra.mxu0 %vm126_vm0, %v83_v15  ;;  %1312 = vmatprep.subr.bf16.mxu1 %v1435_v21 }
  0x2e   :  { %203 = vmatprep.mubr.bf16.mxu0 %v1567_v2  ;;  %1387 = vmatpush3.bf16.msra.mxu0 %v1444_v46 }
  0x2f   :  { %1388 = vmatprep.subr.bf16.mxu0 %v1445_v47 }
  0x30   :  { %1313 = vmatpush3.bf16.msra.mxu1 %v1436_v22 }
  0x31   :  { %1314 = vmatprep.subr.bf16.mxu1 %v1437_v39 }
  0x32   :  { %1389 = vmatpush3.bf16.msra.mxu0 %v1445_v47 }
  0x33   :  { %1390 = vmatprep.subr.bf16.mxu0 %v1446_v48 }
  0x34   :  { %1315 = vmatpush3.bf16.msra.mxu1 %v1438_v40 }
  0x35   :  { %1252 = vmatmul.mubr.msk.bf16.gmra.mxu0 %vm126_vm0, %v84_v23  ;;  %1316 = vmatprep.subr.bf16.mxu1 %v1439_v41 }
  0x36   :  { %213 = vmatprep.mubr.bf16.mxu0 %v1567_v2  ;;  %1391 = vmatpush3.bf16.msra.mxu0 %v1446_v48 }
  0x37   :  { %1392 = vmatprep.subr.bf16.mxu0 %v1447_v49 }
  0x38   :  { %1317 = vmatpush3.bf16.msra.mxu1 %v1440_v42 }
  0x39   :  { %1318 = vmatprep.subr.bf16.mxu1 %v1441_v43 }
  0x3a   :  { %1393 = vmatpush3.bf16.msra.mxu0 %v1447_v49 }
  0x3b   :  { %1394 = vmatprep.subr.bf16.mxu0 %v1448_v50 }
  0x3c   :  { %1319 = vmatpush3.bf16.msra.mxu1 %v1442_v44 }
  0x3d   :  { %1253 = vmatmul.mubr.msk.bf16.gmra.mxu0 %vm126_vm0, %v85_v26 }
  0x3e   :  { %223 = vmatprep.mubr.bf16.mxu0 %v1567_v2  ;;  %1395 = vmatpush3.bf16.msra.mxu0 %v1448_v50 }
  0x45   :  { %1254 = vmatmul.mubr.msk.bf16.gmra.mxu0 %vm126_vm0, %v86_v29 }
  0x46   :  { %233 = vmatprep.mubr.bf16.mxu0 %v1567_v2 }
  0x4d   :  { %1255 = vmatmul.mubr.msk.bf16.gmra.mxu0 %vm126_vm0, %v87_v32 }
  0x4e   :  { %243 = vmatprep.mubr.bf16.mxu0 %v1567_v2 }
  0x55   :  { %1256 = vmatmul.mubr.msk.bf16.gmra.mxu0 %vm126_vm0, %v88_v35 }
  0x56   :  { %253 = vmatprep.mubr.bf16.mxu0 %v1567_v2 }
  0x5d   :  { %1257 = vmatmul.mubr.msk.bf16.gmra.mxu0 %vm126_vm0, %v89_v38 }
  0xe5   :  { %v185_v56 = vpop.f32.mrf.mxu0 }
  0xe6   :  { %v186_v63 = vadd.f32 %v185_v56, %v1788_v58 }
  0xe7   :  { %v187_v59 = vpop.f32.mrf.mxu0 }
  0xe8   :  { %v188_v61 = vadd.f32 %v187_v59, %v1786_v57  ;;  %v264_v6 = vmax.f32 %v186_v63, 0.0 }
  0xe9   :  { %v189_v60 = vpop.f32.mrf.mxu0 }
  0xea   :  { %v190_v62 = vadd.f32 %v189_v60, %v1788_v58  ;;  %v265_v4 = vmax.f32 %v188_v61, 0.0 }
  0xeb   :  { %v191_v0 = vpop.f32.mrf.mxu0 }
  0xec   :  { %v192_v1 = vadd.f32 %v191_v0, %v1786_v57  ;;  %v266_v2 = vmax.f32 %v190_v62, 0.0 }
  0xed   :  { %v195_v3 = vpop.f32.mrf.mxu0 }
  0xee   :  { %v267_v5 = vmax.f32 %v192_v1, 0.0  ;;  %v296_v9 = vpack.c.bf16 %v266_v2, %v264_v6  ;;  %v196_v13 = vadd.f32 %v195_v3, %v1788_v58 }
  0xef   :  { %v197_v7 = vpop.f32.mrf.mxu0 }
  0xf0   :  { %v297_v8 = vpack.c.bf16 %v267_v5, %v265_v4  ;;  %v198_v11 = vadd.f32 %v197_v7, %v1786_v57  ;;  %v268_v20 = vmax.f32 %v196_v13, 0.0 }
  0xf1   :  { %v199_v10 = vpop.f32.mrf.mxu0 }
  0xf2   :  { %v200_v12 = vadd.f32 %v199_v10, %v1788_v58  ;;  %479 = vmatprep.mubr.bf16.mxu1 %v297_v8  ;;  %v269_v18 = vmax.f32 %v198_v11, 0.0 }
  0xf3   :  { %v201_v14 = vpop.f32.mrf.mxu0  ;;  %480 = vmatmul.mubr.bf16.vlgmr.msra.gmra.mxu1 %v296_v9 }
  0xf4   :  { %v202_v15 = vadd.f32 %v201_v14, %v1786_v57  ;;  %v270_v16 = vmax.f32 %v200_v12, 0.0 }
  0xf5   :  { %v205_v17 = vpop.f32.mrf.mxu0 }
  0xf6   :  { %v271_v19 = vmax.f32 %v202_v15, 0.0  ;;  %v298_v23 = vpack.c.bf16 %v270_v16, %v268_v20  ;;  %v206_v27 = vadd.f32 %v205_v17, %v1788_v58 }
  0xf7   :  { %v207_v21 = vpop.f32.mrf.mxu0 }
  0xf8   :  { %v299_v22 = vpack.c.bf16 %v271_v19, %v269_v18  ;;  %v208_v25 = vadd.f32 %v207_v21, %v1786_v57  ;;  %v272_v34 = vmax.f32 %v206_v27, 0.0 }
  0xf9   :  { %v209_v24 = vpop.f32.mrf.mxu0 }
  0xfa   :  { %v210_v26 = vadd.f32 %v209_v24, %v1788_v58  ;;  %487 = vmatprep.mubr.bf16.mxu1 %v299_v22  ;;  %v273_v32 = vmax.f32 %v208_v25, 0.0 }
  0xfb   :  { %v211_v28 = vpop.f32.mrf.mxu0  ;;  %488 = vmatmul.mubr.bf16.gmra.mxu1 %v298_v23 }
  0xfc   :  { %v212_v29 = vadd.f32 %v211_v28, %v1786_v57  ;;  %v274_v30 = vmax.f32 %v210_v26, 0.0 }
  0xfd   :  { %v215_v31 = vpop.f32.mrf.mxu0 }
  0xfe   :  { %v275_v33 = vmax.f32 %v212_v29, 0.0  ;;  %v300_v37 = vpack.c.bf16 %v274_v30, %v272_v34  ;;  %v216_v41 = vadd.f32 %v215_v31, %v1788_v58 }
  0xff   :  { %v217_v35 = vpop.f32.mrf.mxu0 }
 0x100   :  { %v301_v36 = vpack.c.bf16 %v275_v33, %v273_v32  ;;  %v218_v39 = vadd.f32 %v217_v35, %v1786_v57  ;;  %v276_v48 = vmax.f32 %v216_v41, 0.0 }
 0x101   :  { %v219_v38 = vpop.f32.mrf.mxu0 }
 0x102   :  { %v220_v40 = vadd.f32 %v219_v38, %v1788_v58  ;;  %495 = vmatprep.mubr.bf16.mxu1 %v301_v36  ;;  %v277_v46 = vmax.f32 %v218_v39, 0.0 }
 0x103   :  { %v221_v42 = vpop.f32.mrf.mxu0  ;;  %496 = vmatmul.mubr.bf16.gmra.mxu1 %v300_v37 }
 0x104   :  { %v222_v43 = vadd.f32 %v221_v42, %v1786_v57  ;;  %v278_v44 = vmax.f32 %v220_v40, 0.0 }
 0x105   :  { %v225_v45 = vpop.f32.mrf.mxu0 }
 0x106   :  { %v279_v47 = vmax.f32 %v222_v43, 0.0  ;;  %v302_v53 = vpack.c.bf16 %v278_v44, %v276_v48  ;;  %v226_v59 = vadd.f32 %v225_v45, %v1788_v58 }
 0x107   :  { %v227_v49 = vpop.f32.mrf.mxu0 }
 0x108   :  { %v303_v50 = vpack.c.bf16 %v279_v47, %v277_v46  ;;  %v228_v55 = vadd.f32 %v227_v49, %v1786_v57  ;;  %v280_v2 = vmax.f32 %v226_v59, 0.0  ;;  %v1449_v46 = vld [vmem:[%s2113_s5 + $0x8] sm:$0xff]   ;;  %v1831_v49 = vld [vmem:[%s2112_s4] ss:$0 sm:$0xff] }
 0x109   :  { %v229_v54 = vpop.f32.mrf.mxu0  ;;  %1396 = vmatprep.subr.bf16.mxu0 %v1449_v46 }
 0x10a   :  { %v230_v56 = vadd.f32 %v229_v54, %v1788_v58  ;;  %503 = vmatprep.mubr.bf16.mxu1 %v303_v50  ;;  %v281_v0 = vmax.f32 %v228_v55, 0.0  ;;  %1397 = vmatpush3.bf16.msra.mxu0 %v1449_v46 }
 0x10b   :  { %v231_v60 = vpop.f32.mrf.mxu0  ;;  %504 = vmatmul.mubr.bf16.gmra.mxu1 %v302_v53 }
 0x10c   :  { %v232_v61 = vadd.f32 %v231_v60, %v1786_v57  ;;  %v282_v62 = vmax.f32 %v230_v56, 0.0 }
 0x10d   :  { %v235_v63 = vpop.f32.mrf.mxu0 }
 0x10e   :  { %v283_v1 = vmax.f32 %v232_v61, 0.0  ;;  %v304_v5 = vpack.c.bf16 %v282_v62, %v280_v2  ;;  %v236_v9 = vadd.f32 %v235_v63, %v1788_v58 }
 0x10f   :  { %v237_v3 = vpop.f32.mrf.mxu0 }
 0x110   :  { %v305_v4 = vpack.c.bf16 %v283_v1, %v281_v0  ;;  %v238_v7 = vadd.f32 %v237_v3, %v1786_v57  ;;  %v284_v16 = vmax.f32 %v236_v9, 0.0 }
 0x111   :  { %v239_v6 = vpop.f32.mrf.mxu0 }
 0x112   :  { %v240_v8 = vadd.f32 %v239_v6, %v1788_v58  ;;  %511 = vmatprep.mubr.bf16.mxu1 %v305_v4  ;;  %v285_v14 = vmax.f32 %v238_v7, 0.0 }
 0x113   :  { %v241_v10 = vpop.f32.mrf.mxu0  ;;  %512 = vmatmul.mubr.bf16.gmra.mxu1 %v304_v5 }
 0x114   :  { %v242_v11 = vadd.f32 %v241_v10, %v1786_v57  ;;  %v286_v12 = vmax.f32 %v240_v8, 0.0 }
 0x115   :  { %v245_v13 = vpop.f32.mrf.mxu0 }
 0x116   :  { %v287_v15 = vmax.f32 %v242_v11, 0.0  ;;  %v306_v19 = vpack.c.bf16 %v286_v12, %v284_v16  ;;  %v246_v23 = vadd.f32 %v245_v13, %v1788_v58 }
 0x117   :  { %v247_v17 = vpop.f32.mrf.mxu0 }
 0x118   :  { %v307_v18 = vpack.c.bf16 %v287_v15, %v285_v14  ;;  %v248_v21 = vadd.f32 %v247_v17, %v1786_v57  ;;  %v288_v30 = vmax.f32 %v246_v23, 0.0 }
 0x119   :  { %v249_v20 = vpop.f32.mrf.mxu0 }
 0x11a   :  { %v250_v22 = vadd.f32 %v249_v20, %v1788_v58  ;;  %519 = vmatprep.mubr.bf16.mxu1 %v307_v18  ;;  %v289_v28 = vmax.f32 %v248_v21, 0.0 }
 0x11b   :  { %v251_v24 = vpop.f32.mrf.mxu0  ;;  %520 = vmatmul.mubr.bf16.gmra.mxu1 %v306_v19 }
 0x11c   :  { %v252_v25 = vadd.f32 %v251_v24, %v1786_v57  ;;  %v290_v26 = vmax.f32 %v250_v22, 0.0 }
 0x11d   :  { %v255_v27 = vpop.f32.mrf.mxu0 }
 0x11e   :  { %v291_v29 = vmax.f32 %v252_v25, 0.0  ;;  %v308_v33 = vpack.c.bf16 %v290_v26, %v288_v30  ;;  %v256_v37 = vadd.f32 %v255_v27, %v1788_v58 }
 0x11f   :  { %v257_v31 = vpop.f32.mrf.mxu0 }
 0x120   :  { %v309_v32 = vpack.c.bf16 %v291_v29, %v289_v28  ;;  %v258_v35 = vadd.f32 %v257_v31, %v1786_v57  ;;  %v292_v43 = vmax.f32 %v256_v37, 0.0 }
 0x121   :  { %v259_v34 = vpop.f32.mrf.mxu0 }
 0x122   :  { %v260_v36 = vadd.f32 %v259_v34, %v1788_v58  ;;  %527 = vmatprep.mubr.bf16.mxu1 %v309_v32  ;;  %v293_v41 = vmax.f32 %v258_v35, 0.0  ;;  %v1450_v58 = vld [vmem:[%s2113_s5] sm:$0xff]  }
 0x123   :  { %v261_v38 = vpop.f32.mrf.mxu0  ;;  %528 = vmatmul.mubr.bf16.gmra.mxu1 %v308_v33  ;;  %1398 = vmatprep.subr.bf16.mxu0 %v1450_v58 }
 0x124   :  { %v262_v39 = vadd.f32 %v261_v38, %v1786_v57  ;;  %v294_v40 = vmax.f32 %v260_v36, 0.0  ;;  %1399 = vmatpush3.bf16.msra.mxu0 %v1450_v58 }
 0x126   :  { %v295_v42 = vmax.f32 %v262_v39, 0.0  ;;  %v310_v45 = vpack.c.bf16 %v294_v40, %v292_v43 }
 0x128   :  { %v311_v44 = vpack.c.bf16 %v295_v42, %v293_v41 }
 0x12a   :  { %535 = vmatprep.mubr.bf16.mxu1 %v311_v44 }
 0x12b   :  { %536 = vmatmul.mubr.bf16.gmra.mxu1 %v310_v45 }
 0x1b3   :  { %v1320_v57 = vpop.f32.mrf.mxu1 }
 0x1b5   :  { %v1321_v47 = vpop.f32.mrf.mxu1 }
 0x1b6   :  { %v1322_v48 = vadd.f32 %v1321_v47, %v1320_v57 }
 0x1b7   :  { %v1323_v50 = vpop.f32.mrf.mxu1 }
 0x1b8   :  { %v482_v54 = vadd.f32 %v1322_v48, %v1831_v49 }
 0x1b9   :  { %v1324_v53 = vpop.f32.mrf.mxu1 }
 0x1ba   :  { %v1325_v55 = vadd.f32 %v1324_v53, %v1323_v50  ;;  %v544_v61 = vmax.f32 %v482_v54, 0.0 }
 0x1bb   :  { %v1326_v56 = vpop.f32.mrf.mxu1 }
 0x1bc   :  { %v485_v59 = vadd.f32 %v1325_v55, %v1831_v49 }
 0x1bd   :  { %v1327_v60 = vpop.f32.mrf.mxu1 }
 0x1be   :  { %v545_v62 = vmax.f32 %v485_v59, 0.0  ;;  %v1328_v63 = vadd.f32 %v1327_v60, %v1326_v56 }
 0x1bf   :  { %v1329_v0 = vpop.f32.mrf.mxu1 }
 0x1c0   :  { %v560_v1 = vpack.c.bf16 %v545_v62, %v544_v61  ;;  %v490_v3 = vadd.f32 %v1328_v63, %v1831_v49 }
 0x1c1   :  { %v1330_v2 = vpop.f32.mrf.mxu1 }
 0x1c2   :  { %v1331_v4 = vadd.f32 %v1330_v2, %v1329_v0  ;;  %1400 = vmatprep.mubr.bf16.mxu0 %v560_v1  ;;  %v546_v8 = vmax.f32 %v490_v3, 0.0 }
 0x1c3   :  { %v1332_v5 = vpop.f32.mrf.mxu1 }
 0x1c4   :  { %v493_v6 = vadd.f32 %v1331_v4, %v1831_v49 }
 0x1c5   :  { %v1333_v7 = vpop.f32.mrf.mxu1 }
 0x1c6   :  { %v547_v9 = vmax.f32 %v493_v6, 0.0  ;;  %v1334_v10 = vadd.f32 %v1333_v7, %v1332_v5 }
 0x1c7   :  { %v1335_v11 = vpop.f32.mrf.mxu1 }
 0x1c8   :  { %v561_v12 = vpack.c.bf16 %v547_v9, %v546_v8  ;;  %v498_v14 = vadd.f32 %v1334_v10, %v1831_v49 }
 0x1c9   :  { %v1336_v13 = vpop.f32.mrf.mxu1 }
 0x1ca   :  { %v1337_v15 = vadd.f32 %v1336_v13, %v1335_v11  ;;  %1401 = vmatmul.mubr.bf16.vlgmr.msra.gmra.mxu0 %v561_v12  ;;  %v548_v19 = vmax.f32 %v498_v14, 0.0  ;;  %v1852_v14 = vld [vmem:[%s2114_s6] ss:$0 sm:$0xff]  ;;  %s1286_s6 = sld [smem:[#allocation3 + $0x1]] }
 0x1cb   :  { %v1338_v16 = vpop.f32.mrf.mxu1 }
 0x1cc   :  { %v501_v17 = vadd.f32 %v1337_v15, %v1831_v49 }
 0x1cd   :  { %v1339_v18 = vpop.f32.mrf.mxu1 }
 0x1ce   :  { %v549_v20 = vmax.f32 %v501_v17, 0.0  ;;  %v1340_v21 = vadd.f32 %v1339_v18, %v1338_v16  ;;  %v1858_v18 = vld [vmem:[%s2115_s7 + $0x1] ss:$0 sm:$0xff] }
 0x1cf   :  { %v1341_v22 = vpop.f32.mrf.mxu1 }
 0x1d0   :  { %v562_v23 = vpack.c.bf16 %v549_v20, %v548_v19  ;;  %v506_v25 = vadd.f32 %v1340_v21, %v1831_v49 }
 0x1d1   :  { %v1342_v24 = vpop.f32.mrf.mxu1 }
 0x1d2   :  { %v1343_v26 = vadd.f32 %v1342_v24, %v1341_v22  ;;  %1404 = vmatprep.mubr.bf16.mxu0 %v562_v23  ;;  %v550_v30 = vmax.f32 %v506_v25, 0.0 }
 0x1d3   :  { %v1344_v27 = vpop.f32.mrf.mxu1 }
 0x1d4   :  { %v509_v28 = vadd.f32 %v1343_v26, %v1831_v49 }
 0x1d5   :  { %v1345_v29 = vpop.f32.mrf.mxu1 }
 0x1d6   :  { %v551_v31 = vmax.f32 %v509_v28, 0.0  ;;  %v1346_v32 = vadd.f32 %v1345_v29, %v1344_v27 }
 0x1d7   :  { %v1347_v33 = vpop.f32.mrf.mxu1 }
 0x1d8   :  { %v563_v34 = vpack.c.bf16 %v551_v31, %v550_v30  ;;  %v514_v36 = vadd.f32 %v1346_v32, %v1831_v49 }
 0x1d9   :  { %v1348_v35 = vpop.f32.mrf.mxu1 }
 0x1da   :  { %v1349_v37 = vadd.f32 %v1348_v35, %v1347_v33  ;;  %1405 = vmatmul.mubr.bf16.gmra.mxu0 %v563_v34  ;;  %v552_v41 = vmax.f32 %v514_v36, 0.0 }
 0x1db   :  { %v1350_v38 = vpop.f32.mrf.mxu1 }
 0x1dc   :  { %v517_v39 = vadd.f32 %v1349_v37, %v1831_v49 }
 0x1dd   :  { %v1351_v40 = vpop.f32.mrf.mxu1 }
 0x1de   :  { %v553_v42 = vmax.f32 %v517_v39, 0.0  ;;  %v1352_v43 = vadd.f32 %v1351_v40, %v1350_v38 }
 0x1df   :  { %v1353_v44 = vpop.f32.mrf.mxu1 }
 0x1e0   :  { %v564_v45 = vpack.c.bf16 %v553_v42, %v552_v41  ;;  %v522_v58 = vadd.f32 %v1352_v43, %v1831_v49 }
 0x1e1   :  { %v1354_v46 = vpop.f32.mrf.mxu1 }
 0x1e2   :  { %v1355_v57 = vadd.f32 %v1354_v46, %v1353_v44  ;;  %1408 = vmatprep.mubr.bf16.mxu0 %v564_v45  ;;  %v554_v53 = vmax.f32 %v522_v58, 0.0 }
 0x1e3   :  { %v1356_v47 = vpop.f32.mrf.mxu1 }
 0x1e4   :  { %v525_v48 = vadd.f32 %v1355_v57, %v1831_v49 }
 0x1e5   :  { %v1357_v50 = vpop.f32.mrf.mxu1 }
 0x1e6   :  { %v555_v54 = vmax.f32 %v525_v48, 0.0  ;;  %v1358_v55 = vadd.f32 %v1357_v50, %v1356_v47 }
 0x1e7   :  { %v1359_v56 = vpop.f32.mrf.mxu1 }
 0x1e8   :  { %v565_v59 = vpack.c.bf16 %v555_v54, %v554_v53  ;;  %v530_v61 = vadd.f32 %v1358_v55, %v1831_v49 }
 0x1e9   :  { %v1360_v60 = vpop.f32.mrf.mxu1 }
 0x1ea   :  { %v1361_v62 = vadd.f32 %v1360_v60, %v1359_v56  ;;  %1409 = vmatmul.mubr.bf16.gmra.mxu0 %v565_v59  ;;  %v556_v2 = vmax.f32 %v530_v61, 0.0 }
 0x1eb   :  { %v1362_v63 = vpop.f32.mrf.mxu1 }
 0x1ec   :  { %v533_v0 = vadd.f32 %v1361_v62, %v1831_v49 }
 0x1ed   :  { %v1363_v1 = vpop.f32.mrf.mxu1 }
 0x1ee   :  { %v557_v3 = vmax.f32 %v533_v0, 0.0  ;;  %v1364_v4 = vadd.f32 %v1363_v1, %v1362_v63 }
 0x1ef   :  { %v1365_v5 = vpop.f32.mrf.mxu1 }
 0x1f0   :  { %v566_v6 = vpack.c.bf16 %v557_v3, %v556_v2  ;;  %v538_v8 = vadd.f32 %v1364_v4, %v1831_v49 }
 0x1f1   :  { %v1366_v7 = vpop.f32.mrf.mxu1 }
 0x1f2   :  { %v1367_v9 = vadd.f32 %v1366_v7, %v1365_v5  ;;  %1412 = vmatprep.mubr.bf16.mxu0 %v566_v6  ;;  %v558_v11 = vmax.f32 %v538_v8, 0.0 }
 0x1f4   :  { %v541_v10 = vadd.f32 %v1367_v9, %v1831_v49  ;;  %v1863_v49 = vld [vmem:[%s2115_s7] ss:$0 sm:$0xff]  ;;  %s822_s7 = sld [smem:[#allocation3]] }
 0x1f6   :  { %v559_v12 = vmax.f32 %v541_v10, 0.0 }
 0x1f8   :  { %v567_v13 = vpack.c.bf16 %v559_v12, %v558_v11 }
 0x1fa   :  { %1413 = vmatmul.mubr.bf16.gmra.mxu0 %v567_v13 }
 0x28a   :  { %v1402_v15 = vpop.f32.mrf.mxu0 }
 0x28b   :  { %v682_v16 = vadd.f32 %v1402_v15, %v1852_v14 }
 0x28c   :  { %v673_v17 = vpop.f32.mrf.mxu0 }
 0x28d   :  { %v738_v19 = vmax.f32 %v682_v16, 0.0  ;;  %v674_v20 = vadd.f32 %v1852_v14, %v673_v17 }
 0x28e   :  { %v1403_v21 = vpop.f32.mrf.mxu0 }
 0x28f   :  { %v736_v22 = vmax.f32 %v674_v20, 0.0  ;;  %v685_v23 = vadd.f32 %v1403_v21, %v1852_v14  ;;  %v847_v24 = vmul.f32 %v1858_v18, %v738_v19  ;;  %v759_v25 = vmul.f32 %v1863_v49, %v738_v19 }
 0x290   :  { %v676_v26 = vpop.f32.mrf.mxu0 }
 0x291   :  { %v739_v27 = vmax.f32 %v685_v23, 0.0  ;;  %v677_v28 = vadd.f32 %v1852_v14, %v676_v26  ;;  %v867_v29 = vsel %vm773_vm1, %v847_v24, 0.0  ;;  %v780_v30 = vsel %vm773_vm1, %v759_v25, 0.0 }
 0x292   :  { %868 = vadd.xlane.f32.xlu1 %v867_v29  ;;  %781 = vadd.xlane.f32.xlu0 %v780_v30  ;;  %v845_v31 = vmul.f32 %v1858_v18, %v736_v22  ;;  %v757_v32 = vmul.f32 %v1863_v49, %v736_v22 }
 0x293   :  { %v737_v33 = vmax.f32 %v677_v28, 0.0  ;;  %v848_v36 = vmul.f32 %v1858_v18, %v739_v27  ;;  %v760_v37 = vmul.f32 %v1863_v49, %v739_v27 }
 0x294   :  { %v861_v34 = vsel %vm773_vm1, %v845_v31, 0.0  ;;  %v774_v35 = vsel %vm773_vm1, %v757_v32, 0.0 }
 0x295   :  { %v870_v38 = vsel %vm773_vm1, %v848_v36, 0.0  ;;  %v783_v39 = vsel %vm773_vm1, %v760_v37, 0.0  ;;  %v846_v40 = vmul.f32 %v1858_v18, %v737_v33  ;;  %v758_v41 = vmul.f32 %v1863_v49, %v737_v33 }
 0x296   :  { %862 = vadd.xlane.f32.xlu1 %v861_v34  ;;  %775 = vadd.xlane.f32.xlu0 %v774_v35 }
 0x297   :  { %v864_v58 = vsel %vm773_vm1, %v846_v40, 0.0  ;;  %v777_v57 = vsel %vm773_vm1, %v758_v41, 0.0 }
 0x29a   :  { %v1406_v42 = vpop.f32.mrf.mxu0  ;;  %871 = vadd.xlane.f32.xlu1 %v870_v38  ;;  %784 = vadd.xlane.f32.xlu0 %v783_v39 }
 0x29b   :  { %v698_v43 = vadd.f32 %v1406_v42, %v1852_v14 }
 0x29c   :  { %v689_v44 = vpop.f32.mrf.mxu0 }
 0x29d   :  { %v742_v45 = vmax.f32 %v698_v43, 0.0  ;;  %v690_v46 = vadd.f32 %v1852_v14, %v689_v44 }
 0x29e   :  { %v1407_v47 = vpop.f32.mrf.mxu0  ;;  %865 = vadd.xlane.f32.xlu1 %v864_v58  ;;  %778 = vadd.xlane.f32.xlu0 %v777_v57 }
 0x29f   :  { %v740_v48 = vmax.f32 %v690_v46, 0.0  ;;  %v701_v50 = vadd.f32 %v1407_v47, %v1852_v14  ;;  %v851_v53 = vmul.f32 %v1858_v18, %v742_v45  ;;  %v763_v54 = vmul.f32 %v1863_v49, %v742_v45 }
 0x2a0   :  { %v692_v55 = vpop.f32.mrf.mxu0 }
 0x2a1   :  { %v743_v56 = vmax.f32 %v701_v50, 0.0  ;;  %v693_v59 = vadd.f32 %v1852_v14, %v692_v55  ;;  %v879_v60 = vsel %vm773_vm1, %v851_v53, 0.0  ;;  %v792_v61 = vsel %vm773_vm1, %v763_v54, 0.0 }
 0x2a2   :  { %880 = vadd.xlane.f32.xlu1 %v879_v60  ;;  %793 = vadd.xlane.f32.xlu0 %v792_v61  ;;  %v849_v62 = vmul.f32 %v1858_v18, %v740_v48  ;;  %v761_v63 = vmul.f32 %v1863_v49, %v740_v48 }
 0x2a3   :  { %v741_v0 = vmax.f32 %v693_v59, 0.0  ;;  %v852_v3 = vmul.f32 %v1858_v18, %v743_v56  ;;  %v764_v4 = vmul.f32 %v1863_v49, %v743_v56 }
 0x2a4   :  { %v873_v1 = vsel %vm773_vm1, %v849_v62, 0.0  ;;  %v786_v2 = vsel %vm773_vm1, %v761_v63, 0.0 }
 0x2a5   :  { %v882_v5 = vsel %vm773_vm1, %v852_v3, 0.0  ;;  %v795_v6 = vsel %vm773_vm1, %v764_v4, 0.0  ;;  %v850_v7 = vmul.f32 %v1858_v18, %v741_v0  ;;  %v762_v8 = vmul.f32 %v1863_v49, %v741_v0 }
 0x2a6   :  { %874 = vadd.xlane.f32.xlu1 %v873_v1  ;;  %787 = vadd.xlane.f32.xlu0 %v786_v2 }
 0x2a7   :  { %v876_v15 = vsel %vm773_vm1, %v850_v7, 0.0  ;;  %v789_v16 = vsel %vm773_vm1, %v762_v8, 0.0 }
 0x2aa   :  { %v1410_v9 = vpop.f32.mrf.mxu0  ;;  %883 = vadd.xlane.f32.xlu1 %v882_v5  ;;  %796 = vadd.xlane.f32.xlu0 %v795_v6 }
 0x2ab   :  { %v714_v10 = vadd.f32 %v1410_v9, %v1852_v14  ;;  %v1944_v9 = vstv %s1286_s6 }
 0x2ac   :  { %v705_v11 = vpop.f32.mrf.mxu0 }
 0x2ad   :  { %v746_v12 = vmax.f32 %v714_v10, 0.0  ;;  %v706_v13 = vadd.f32 %v1852_v14, %v705_v11  ;;  %v1946_v10 = vstv %s822_s7 }
 0x2ae   :  { %v1411_v17 = vpop.f32.mrf.mxu0  ;;  %877 = vadd.xlane.f32.xlu1 %v876_v15  ;;  %790 = vadd.xlane.f32.xlu0 %v789_v16 }
 0x2af   :  { %v744_v19 = vmax.f32 %v706_v13, 0.0  ;;  %v717_v20 = vadd.f32 %v1411_v17, %v1852_v14  ;;  %v855_v21 = vmul.f32 %v1858_v18, %v746_v12  ;;  %v767_v22 = vmul.f32 %v1863_v49, %v746_v12 }
 0x2b0   :  { %v708_v23 = vpop.f32.mrf.mxu0 }
 0x2b1   :  { %v747_v24 = vmax.f32 %v717_v20, 0.0  ;;  %v709_v25 = vadd.f32 %v1852_v14, %v708_v23  ;;  %v891_v26 = vsel %vm773_vm1, %v855_v21, 0.0  ;;  %v804_v27 = vsel %vm773_vm1, %v767_v22, 0.0 }
 0x2b2   :  { %892 = vadd.xlane.f32.xlu1 %v891_v26  ;;  %805 = vadd.xlane.f32.xlu0 %v804_v27  ;;  %v853_v28 = vmul.f32 %v1858_v18, %v744_v19  ;;  %v765_v29 = vmul.f32 %v1863_v49, %v744_v19  ;;  %v1952_v19 = vstv %s1287_s29  ;;  %v1954_v21 = vstv %s959_s30 }
 0x2b3   :  { %v745_v30 = vmax.f32 %v709_v25, 0.0  ;;  %v856_v33 = vmul.f32 %v1858_v18, %v747_v24  ;;  %v768_v34 = vmul.f32 %v1863_v49, %v747_v24 }
 0x2b4   :  { %v885_v31 = vsel %vm773_vm1, %v853_v28, 0.0  ;;  %v798_v32 = vsel %vm773_vm1, %v765_v29, 0.0 }
 0x2b5   :  { %v894_v35 = vsel %vm773_vm1, %v856_v33, 0.0  ;;  %v807_v36 = vsel %vm773_vm1, %v768_v34, 0.0  ;;  %v854_v37 = vmul.f32 %v1858_v18, %v745_v30  ;;  %v766_v38 = vmul.f32 %v1863_v49, %v745_v30 }
 0x2b6   :  { %886 = vadd.xlane.f32.xlu1 %v885_v31  ;;  %799 = vadd.xlane.f32.xlu0 %v798_v32 }
 0x2b7   :  { %v888_v44 = vsel %vm773_vm1, %v854_v37, 0.0  ;;  %v801_v45 = vsel %vm773_vm1, %v766_v38, 0.0 }
 0x2ba   :  { %v1414_v39 = vpop.f32.mrf.mxu0  ;;  %895 = vadd.xlane.f32.xlu1 %v894_v35  ;;  %808 = vadd.xlane.f32.xlu0 %v807_v36 }
 0x2bb   :  { %v730_v40 = vadd.f32 %v1414_v39, %v1852_v14  ;;  %v1967_v39 = vstv %s2118_s10  ;;  %s1569_s10 = smov [#allocation8]  }
 0x2bc   :  { %v721_v41 = vpop.f32.mrf.mxu0  ;;  %s1236_s14 = sshll.u32 %s1569_s10, 4  ;;  %s1237_s14 = int_to_ptr.vmem [resolvable:$true] %s1236_s14 }
 0x2bd   :  { %v750_v42 = vmax.f32 %v730_v40, 0.0  ;;  %v722_v43 = vadd.f32 %v1852_v14, %v721_v41  ;;  %s1539_s15 = scalar_lea.vmem %s1237_s14, 16  ;;  %s1543_s16 = scalar_lea.vmem %s1237_s14, 32 }
 0x2be   :  { %v1415_v46 = vpop.f32.mrf.mxu0  ;;  %889 = vadd.xlane.f32.xlu1 %v888_v44  ;;  %802 = vadd.xlane.f32.xlu0 %v801_v45  ;;  %p1540_p10 = scmp.ne.s32.totalorder %s1237_s14, %s1539_s15  ;;  %p1544_p11 = scmp.lt.s32.totalorder %s1237_s14, %s1237_s14 }
 0x2bf   :  { %v748_v58 = vmax.f32 %v722_v43, 0.0  ;;  %v859_v57 = vmul.f32 %v1858_v18, %v750_v42  ;;  %v771_v47 = vmul.f32 %v1863_v49, %v750_v42  ;;  %v733_v48 = vadd.f32 %v1415_v46, %v1852_v14  ;;  %p1545_p12 = scmp.lt.s32.totalorder %s1543_s16, %s1539_s15 }
 0x2c0   :  { %v724_v50 = vpop.f32.mrf.mxu0 }
 0x2c1   :  { %v725_v53 = vadd.f32 %v1852_v14, %v724_v50  ;;  %v903_v54 = vsel %vm773_vm1, %v859_v57, 0.0  ;;  %v816_v55 = vsel %vm773_vm1, %v771_v47, 0.0  ;;  %v857_v56 = vmul.f32 %v1858_v18, %v748_v58  ;;  %p1546_p13 = por %p1545_p12, %p1544_p11 }
 0x2c2   :  { %904 = vadd.xlane.f32.xlu1 %v903_v54  ;;  %817 = vadd.xlane.f32.xlu0 %v816_v55  ;;  %v769_v59 = vmul.f32 %v1863_v49, %v748_v58  ;;  %v751_v61 = vmax.f32 %v733_v48, 0.0 }
 0x2c3   :  { %v749_v60 = vmax.f32 %v725_v53, 0.0  ;;  %v897_v62 = vsel %vm773_vm1, %v857_v56, 0.0  ;;  %p1547_p0 = pnand %p1546_p13, %p1540_p10 }
 0x2c4   :  { %v810_v63 = vsel %vm773_vm1, %v769_v59, 0.0  ;;  %v860_v3 = vmul.f32 %v1858_v18, %v751_v61  ;;  %v772_v4 = vmul.f32 %v1863_v49, %v751_v61 }
 0x2c5   :  { %v858_v0 = vmul.f32 %v1858_v18, %v749_v60  ;;  %v770_v14 = vmul.f32 %v1863_v49, %v749_v60 }
 0x2c6   :  { %898 = vadd.xlane.f32.xlu1 %v897_v62  ;;  %811 = vadd.xlane.f32.xlu0 %v810_v63  ;;  %v906_v5 = vsel %vm773_vm1, %v860_v3, 0.0  ;;  %v819_v6 = vsel %vm773_vm1, %v772_v4, 0.0 }
 0x2c7   :  { %v900_v1 = vsel %vm773_vm1, %v858_v0, 0.0  ;;  %v813_v2 = vsel %vm773_vm1, %v770_v14, 0.0 }
 0x2ca   :  { %901 = vadd.xlane.f32.xlu1 %v900_v1  ;;  %814 = vadd.xlane.f32.xlu0 %v813_v2 }
 0x2ce   :  { %907 = vadd.xlane.f32.xlu1 %v906_v5  ;;  %820 = vadd.xlane.f32.xlu0 %v819_v6 }
 0x31b   :  { %v869_v7 = vpop.xlane.xlu1 %868  ;;  %v782_v8 = vpop.xlane.xlu0 %781 }
 0x31c   :  { %v913_v18 = vadd.f32 %v1944_v9, %v869_v7  ;;  %v826_v49 = vadd.f32 %v1946_v10, %v782_v8 }
 0x31e   :  { %v945_v20 = vmax.f32 %v913_v18, 0.0  ;;  %v929_v22 = vmax.f32 %v826_v49, 0.0 }
 0x31f   :  { %v863_v11 = vpop.xlane.xlu1 %862  ;;  %v776_v12 = vpop.xlane.xlu0 %775 }
 0x320   :  { %v911_v13 = vadd.f32 %v1944_v9, %v863_v11  ;;  %v824_v15 = vadd.f32 %v1946_v10, %v776_v12  ;;  %v981_v29 = vmul.f32 %v1952_v19, %v945_v20  ;;  %v963_v30 = vmul.f32 %v1954_v21, %v929_v22 }
 0x322   :  { %v943_v16 = vmax.f32 %v911_v13, 0.0  ;;  %v927_v17 = vmax.f32 %v824_v15, 0.0  ;;  %v997_v40 = vadd.f32 %v981_v29, %v963_v30 }
 0x323   :  { %v872_v23 = vpop.xlane.xlu1 %871  ;;  %v785_v24 = vpop.xlane.xlu0 %784 }
 0x324   :  { %v979_v25 = vmul.f32 %v1952_v19, %v943_v16  ;;  %v961_v26 = vmul.f32 %v1954_v21, %v927_v17  ;;  %v914_v27 = vadd.f32 %v1944_v9, %v872_v23  ;;  %v827_v28 = vadd.f32 %v1946_v10, %v785_v24 }
 0x325   :  { %v1015_v50 = vadd.f32 %v1967_v39, %v997_v40 }
 0x326   :  { %v995_v33 = vadd.f32 %v979_v25, %v961_v26  ;;  %v946_v35 = vmax.f32 %v914_v27, 0.0  ;;  %v930_v36 = vmax.f32 %v827_v28, 0.0 }
 0x327   :  { %v866_v31 = vpop.xlane.xlu1 %865  ;;  %v779_v32 = vpop.xlane.xlu0 %778  ;;  %v1031_v2 = vsub.f32 0.0, %v1015_v50 }
 0x328   :  { %v912_v34 = vadd.f32 %v1944_v9, %v866_v31  ;;  %v825_v37 = vadd.f32 %v1946_v10, %v779_v32  ;;  %v1013_v44 = vadd.f32 %v1967_v39, %v995_v33  ;;  %v982_v57 = vmul.f32 %v1952_v19, %v946_v35 }
 0x329   :  { %v964_v47 = vmul.f32 %v1954_v21, %v930_v36  ;;  %v1049_v25 = vmul.f32 1.442695, %v1031_v2 }
 0x32a   :  { %v944_v38 = vmax.f32 %v912_v34, 0.0  ;;  %v928_v41 = vmax.f32 %v825_v37, 0.0  ;;  %v1029_v60 = vsub.f32 0.0, %v1013_v44 }
 0x32b   :  { %v881_v42 = vpop.xlane.xlu1 %880  ;;  %v794_v43 = vpop.xlane.xlu0 %793  ;;  %v998_v63 = vadd.f32 %v982_v57, %v964_v47 }
 0x32c   :  { %v980_v45 = vmul.f32 %v1952_v19, %v944_v38  ;;  %v917_v46 = vadd.f32 %v1944_v9, %v881_v42  ;;  %v830_v58 = vadd.f32 %v1946_v10, %v794_v43  ;;  %v962_v48 = vmul.f32 %v1954_v21, %v928_v41 }
 0x32d   :  { %v1045_v8 = vmul.f32 1.442695, %v1029_v60  ;;  %v1016_v12 = vadd.f32 %v1967_v39, %v998_v63 }
 0x32e   :  { %v996_v53 = vadd.f32 %v980_v45, %v962_v48  ;;  %v949_v54 = vmax.f32 %v917_v46, 0.0  ;;  %v933_v55 = vmax.f32 %v830_v58, 0.0 }
 0x32f   :  { %v875_v56 = vpop.xlane.xlu1 %874  ;;  %v788_v59 = vpop.xlane.xlu0 %787  ;;  %1451 = vpow2.f32 %v1045_v8  ;;  %v1032_v27 = vsub.f32 0.0, %v1016_v12 }
 0x330   :  { %v915_v61 = vadd.f32 %v1944_v9, %v875_v56  ;;  %v828_v62 = vadd.f32 %v1946_v10, %v788_v59  ;;  %v1014_v0 = vadd.f32 %v1967_v39, %v996_v53  ;;  %v985_v4 = vmul.f32 %v1952_v19, %v949_v54 }
 0x331   :  { %v967_v5 = vmul.f32 %v1954_v21, %v933_v55  ;;  %v1051_v41 = vmul.f32 1.442695, %v1032_v27 }
 0x332   :  { %v947_v14 = vmax.f32 %v915_v61, 0.0  ;;  %v931_v1 = vmax.f32 %v828_v62, 0.0  ;;  %v1030_v3 = vsub.f32 0.0, %v1014_v0 }
 0x333   :  { %v884_v6 = vpop.xlane.xlu1 %883  ;;  %v797_v7 = vpop.xlane.xlu0 %796  ;;  %v1001_v20 = vadd.f32 %v985_v4, %v967_v5 }
 0x334   :  { %v983_v18 = vmul.f32 %v1952_v19, %v947_v14  ;;  %v965_v49 = vmul.f32 %v1954_v21, %v931_v1  ;;  %v918_v11 = vadd.f32 %v1944_v9, %v884_v6  ;;  %v1047_v13 = vmul.f32 1.442695, %v1030_v3 }
 0x335   :  { %v831_v15 = vadd.f32 %v1946_v10, %v797_v7  ;;  %v1019_v33 = vadd.f32 %v1967_v39, %v1001_v20  ;;  %v2009_v20 = vadd.s32 16, %v1779_v52 }
 0x336   :  { %v999_v16 = vadd.f32 %v983_v18, %v965_v49  ;;  %v950_v17 = vmax.f32 %v918_v11, 0.0  ;;  %1453 = vpow2.f32 %v1047_v13 }
 0x337   :  { %v934_v22 = vmax.f32 %v831_v15, 0.0  ;;  %v878_v23 = vpop.xlane.xlu1 %877  ;;  %v791_v24 = vpop.xlane.xlu0 %790  ;;  %1455 = vpow2.f32 %v1049_v25  ;;  %v1035_v57 = vsub.f32 0.0, %v1019_v33  ;;  %v2020_v33 = vadd.s32 8, %v1779_v52 }
 0x338   :  { %v1017_v26 = vadd.f32 %v1967_v39, %v999_v16  ;;  %v916_v28 = vadd.f32 %v1944_v9, %v878_v23  ;;  %v829_v29 = vadd.f32 %v1946_v10, %v791_v24  ;;  %v986_v31 = vmul.f32 %v1952_v19, %v950_v17 }
 0x339   :  { %v968_v32 = vmul.f32 %v1954_v21, %v934_v22  ;;  %1457 = vpow2.f32 %v1051_v41  ;;  %v1057_v63 = vmul.f32 1.442695, %v1035_v57 }
 0x33a   :  { %v1033_v30 = vsub.f32 0.0, %v1017_v26  ;;  %v948_v34 = vmax.f32 %v916_v28, 0.0  ;;  %v932_v35 = vmax.f32 %v829_v29, 0.0  ;;  %v2016_v29 = vand.u32 127, %v96_v51 }
 0x33b   :  { %v893_v36 = vpop.xlane.xlu1 %892  ;;  %v806_v37 = vpop.xlane.xlu0 %805  ;;  %v1002_v45 = vadd.f32 %v986_v31, %v968_v32 }
 0x33c   :  { %v921_v38 = vadd.f32 %v1944_v9, %v893_v36  ;;  %v834_v40 = vadd.f32 %v1946_v10, %v806_v37  ;;  %v984_v42 = vmul.f32 %v1952_v19, %v948_v34  ;;  %v966_v43 = vmul.f32 %v1954_v21, %v932_v35  ;;  %v1452_v5 = vpop.eup %1451 }
 0x33d   :  { %v1053_v44 = vmul.f32 1.442695, %v1033_v30  ;;  %v1020_v60 = vadd.f32 %v1967_v39, %v1002_v45  ;;  %v1077_v22 = vadd.f32 1.0, %v1452_v5  ;;  %vm1144_vm2 = vcmp.eq.s32.totalorder %v1779_v52, %v2016_v29 }
 0x33e   :  { %v953_v46 = vmax.f32 %v921_v38, 0.0  ;;  %v937_v58 = vmax.f32 %v834_v40, 0.0  ;;  %v1000_v47 = vadd.f32 %v984_v42, %v966_v43  ;;  %vm1145_vm3 = vcmp.eq.s32.totalorder %v2020_v33, %v2016_v29 }
 0x33f   :  { %v887_v48 = vpop.xlane.xlu1 %886  ;;  %v800_v50 = vpop.xlane.xlu0 %799  ;;  %1459 = vpow2.f32 %v1053_v44  ;;  %v1036_v49 = vsub.f32 0.0, %v1020_v60  ;;  %vm1146_vm4 = vcmp.eq.s32.totalorder %v2009_v20, %v2016_v29 }
 0x340   :  { %v989_v53 = vmul.f32 %v1952_v19, %v953_v46  ;;  %v971_v54 = vmul.f32 %v1954_v21, %v937_v58  ;;  %v919_v55 = vadd.f32 %v1944_v9, %v887_v48  ;;  %v832_v56 = vadd.f32 %v1946_v10, %v800_v50 }
 0x341   :  { %v1018_v59 = vadd.f32 %v1967_v39, %v1000_v47  ;;  %1461 = vpow2.f32 %v1057_v63  ;;  %v1059_v30 = vmul.f32 1.442695, %v1036_v49 }
 0x342   :  { %v951_v61 = vmax.f32 %v919_v55, 0.0  ;;  %v935_v62 = vmax.f32 %v832_v56, 0.0  ;;  %v1005_v14 = vadd.f32 %v989_v53, %v971_v54 }
 0x343   :  { %v1034_v0 = vsub.f32 0.0, %v1018_v59  ;;  %v896_v1 = vpop.xlane.xlu1 %895  ;;  %v809_v2 = vpop.xlane.xlu0 %808 }
 0x344   :  { %v987_v3 = vmul.f32 %v1952_v19, %v951_v61  ;;  %v969_v4 = vmul.f32 %v1954_v21, %v935_v62  ;;  %v922_v7 = vadd.f32 %v1944_v9, %v896_v1  ;;  %v835_v8 = vadd.f32 %v1946_v10, %v809_v2  ;;  %v1454_v18 = vpop.eup %1453 }
 0x345   :  { %v1055_v6 = vmul.f32 1.442695, %v1034_v0  ;;  %v1023_v12 = vadd.f32 %v1967_v39, %v1005_v14  ;;  %v1078_v24 = vadd.f32 1.0, %v1454_v18  ;;  %v1456_v28 = vpop.eup %1455 }
 0x346   :  { %v1003_v11 = vadd.f32 %v987_v3, %v969_v4  ;;  %v954_v13 = vmax.f32 %v922_v7, 0.0  ;;  %v938_v15 = vmax.f32 %v835_v8, 0.0  ;;  %v1458_v45 = vpop.eup %1457  ;;  %v1079_v46 = vadd.f32 1.0, %v1456_v28 }
 0x347   :  { %v890_v16 = vpop.xlane.xlu1 %889  ;;  %v803_v17 = vpop.xlane.xlu0 %802  ;;  %1463 = vpow2.f32 %v1055_v6  ;;  %v1039_v34 = vsub.f32 0.0, %v1023_v12  ;;  %v1080_v62 = vadd.f32 1.0, %v1458_v45  ;;  %v1130_v45 = vadd.s32 32, %v1779_v52 }
 0x348   :  { %v1021_v23 = vadd.f32 %v1967_v39, %v1003_v11  ;;  %v990_v25 = vmul.f32 %v1952_v19, %v954_v13  ;;  %v972_v26 = vmul.f32 %v1954_v21, %v938_v15  ;;  %v920_v27 = vadd.f32 %v1944_v9, %v890_v16 }
 0x349   :  { %v833_v32 = vadd.f32 %v1946_v10, %v803_v17  ;;  %1465 = vrcp.f32 %v1077_v22  ;;  %v1065_v48 = vmul.f32 1.442695, %v1039_v34  ;;  %v1568_v34 = vmov 0.0  }
 0x34a   :  { %v1037_v31 = vsub.f32 0.0, %v1021_v23  ;;  %v1006_v35 = vadd.f32 %v990_v25, %v972_v26  ;;  %v952_v36 = vmax.f32 %v920_v27, 0.0  ;;  %1467 = vrcp.f32 %v1078_v24 }
 0x34b   :  { %v905_v37 = vpop.xlane.xlu1 %904  ;;  %v818_v38 = vpop.xlane.xlu0 %817  ;;  %v936_v41 = vmax.f32 %v833_v32, 0.0  ;;  %1469 = vpow2.f32 %v1059_v30  ;;  %v1129_v27 = vadd.s32 24, %v1779_v52  ;;  %vm1148_vm6 = vcmp.eq.s32.totalorder %v1130_v45, %v2016_v29 }
 0x34c   :  { %v1061_v40 = vmul.f32 1.442695, %v1037_v31  ;;  %v925_v42 = vadd.f32 %v1944_v9, %v905_v37  ;;  %v1024_v51 = vadd.f32 %v1967_v39, %v1006_v35  ;;  %v988_v43 = vmul.f32 %v1952_v19, %v952_v36  ;;  %v1460_v47 = vpop.eup %1459 }
 0x34d   :  { %v838_v44 = vadd.f32 %v1946_v10, %v818_v38  ;;  %v970_v58 = vmul.f32 %v1954_v21, %v936_v41  ;;  %v1081_v0 = vadd.f32 1.0, %v1460_v47  ;;  %v1289_v35 = vsel %vm1145_vm3, 1.0, %v1568_v34 }
 0x34e   :  { %v957_v57 = vmax.f32 %v925_v42, 0.0  ;;  %1471 = vpow2.f32 %v1061_v40  ;;  %v1040_v50 = vsub.f32 0.0, %v1024_v51  ;;  %v1462_v7 = vpop.eup %1461  ;;  %vm1147_vm5 = vcmp.eq.s32.totalorder %v1129_v27, %v2016_v29 }
 0x34f   :  { %v941_v53 = vmax.f32 %v838_v44, 0.0  ;;  %v899_v54 = vpop.xlane.xlu1 %898  ;;  %v812_v55 = vpop.xlane.xlu0 %811  ;;  %v1004_v56 = vadd.f32 %v988_v43, %v970_v58  ;;  %1473 = vrcp.f32 %v1079_v46  ;;  %v1083_v36 = vadd.f32 1.0, %v1462_v7 }
 0x350   :  { %v993_v59 = vmul.f32 %v1952_v19, %v957_v57  ;;  %v923_v60 = vadd.f32 %v1944_v9, %v899_v54  ;;  %v836_v61 = vadd.f32 %v1946_v10, %v812_v55  ;;  %v1067_v3 = vmul.f32 1.442695, %v1040_v50 }
 0x351   :  { %v975_v63 = vmul.f32 %v1954_v21, %v941_v53  ;;  %v1022_v14 = vadd.f32 %v1967_v39, %v1004_v56  ;;  %1475 = vpow2.f32 %v1065_v48  ;;  %v1131_v53 = vadd.s32 40, %v1779_v52 }
 0x352   :  { %v955_v1 = vmax.f32 %v923_v60, 0.0  ;;  %v939_v2 = vmax.f32 %v836_v61, 0.0  ;;  %1477 = vrcp.f32 %v1080_v62  ;;  %v1290_v60 = vsel %vm1146_vm4, 1.0, %v1568_v34 }
 0x353   :  { %v1009_v4 = vadd.f32 %v993_v59, %v975_v63  ;;  %v902_v5 = vpop.xlane.xlu1 %901  ;;  %v815_v6 = vpop.xlane.xlu0 %814  ;;  %v1038_v8 = vsub.f32 0.0, %v1022_v14  ;;  %1479 = vrcp.f32 %v1081_v0  ;;  %v1291_v14 = vsel %vm1147_vm5, 1.0, %v1568_v34 }
 0x354   :  { %v991_v18 = vmul.f32 %v1952_v19, %v955_v1  ;;  %v973_v49 = vmul.f32 %v1954_v21, %v939_v2  ;;  %v1464_v11 = vpop.eup %1463  ;;  %v924_v13 = vadd.f32 %v1944_v9, %v902_v5  ;;  %v837_v15 = vadd.f32 %v1946_v10, %v815_v6 }
 0x355   :  { %v1027_v12 = vadd.f32 %v1967_v39, %v1009_v4  ;;  %v1082_v16 = vadd.f32 1.0, %v1464_v11  ;;  %v1063_v17 = vmul.f32 1.442695, %v1038_v8  ;;  %1481 = vpow2.f32 %v1067_v3 }
 0x356   :  { %v1007_v22 = vadd.f32 %v991_v18, %v973_v49  ;;  %v956_v24 = vmax.f32 %v924_v13, 0.0  ;;  %v940_v25 = vmax.f32 %v837_v15, 0.0  ;;  %v1466_v32 = vpop.eup %1465  ;;  %vm1149_vm7 = vcmp.eq.s32.totalorder %v1131_v53, %v2016_v29 }
 0x357   :  { %v1043_v23 = vsub.f32 0.0, %v1027_v12  ;;  %v908_v26 = vpop.xlane.xlu1 %907  ;;  %1483 = vrcp.f32 %v1082_v16  ;;  %v821_v31 = vpop.xlane.xlu0 %820  ;;  %v1132_v4 = vadd.s32 48, %v1779_v52  ;;  %v1292_v5 = vsel %vm1148_vm6, 1.0, %v1568_v34 }
 0x358   :  { %v1025_v28 = vadd.f32 %v1967_v39, %v1007_v22  ;;  %v926_v30 = vadd.f32 %v1944_v9, %v908_v26  ;;  %1485 = vpow2.f32 %v1063_v17  ;;  %v1468_v37 = vpop.eup %1467  ;;  %v992_v41 = vmul.f32 %v1952_v19, %v956_v24 }
 0x359   :  { %v1073_v38 = vmul.f32 1.442695, %v1043_v23  ;;  %v974_v42 = vmul.f32 %v1954_v21, %v940_v25  ;;  %v1470_v51 = vpop.eup %1469  ;;  %v1288_v9 = vsel %vm1144_vm2, 1.0, %v1568_v34  ;;  %v839_v43 = vadd.f32 %v1946_v10, %v821_v31 }
 0x35a   :  { %v1041_v40 = vsub.f32 0.0, %v1025_v28  ;;  %v958_v33 = vmax.f32 %v926_v30, 0.0  ;;  %v1193_v57 = vmul.f32 %v1468_v37, %v1289_v35  ;;  %1487 = vrcp.f32 %v1083_v36 }
 0x35b   :  { %v1472_v44 = vpop.eup %1471  ;;  %v1008_v58 = vadd.f32 %v992_v41, %v974_v42  ;;  %v942_v48 = vmax.f32 %v839_v43, 0.0  ;;  %v1084_v50 = vadd.f32 1.0, %v1470_v51  ;;  %1489 = vpow2.f32 %v1073_v38 }
 0x35c   :  { %v1069_v46 = vmul.f32 1.442695, %v1041_v40  ;;  %v994_v47 = vmul.f32 %v1952_v19, %v958_v33  ;;  %v1192_v55 = vmul.f32 %v1466_v32, %v1288_v9  ;;  %v1085_v10 = vadd.f32 1.0, %v1472_v44  ;;  %v1474_v59 = vpop.eup %1473 }
 0x35d   :  { %v1026_v54 = vadd.f32 %v1967_v39, %v1008_v58  ;;  %v976_v56 = vmul.f32 %v1954_v21, %v942_v48  ;;  %v1194_v2 = vmul.f32 %v1474_v59, %v1290_v60  ;;  %v1293_v11 = vsel %vm1149_vm7, 1.0, %v1568_v34 }
 0x35e   :  { %1491 = vpow2.f32 %v1069_v46  ;;  %v1476_v19 = vpop.eup %1475  ;;  %v1208_v62 = vadd.f32 %v1193_v57, %v1192_v55  ;;  %vm1150_vm8 = vcmp.eq.s32.totalorder %v1132_v4, %v2016_v29  ;;  %v1134_v23 = vadd.s32 64, %v1779_v52 }
 0x35f   :  { %v1042_v61 = vsub.f32 0.0, %v1026_v54  ;;  %v1010_v63 = vadd.f32 %v994_v47, %v976_v56  ;;  %v1478_v0 = vpop.eup %1477  ;;  %1493 = vrcp.f32 %v1084_v50  ;;  %v1087_v6 = vadd.f32 1.0, %v1476_v19 }
 0x360   :  { %v1480_v21 = vpop.eup %1479  ;;  %1495 = vrcp.f32 %v1085_v10  ;;  %v1209_v8 = vadd.f32 %v1208_v62, %v1194_v2  ;;  %v1195_v12 = vmul.f32 %v1478_v0, %v1291_v14  ;;  %v1294_v30 = vsel %vm1150_vm8, 1.0, %v1568_v34 }
 0x361   :  { %v1071_v1 = vmul.f32 1.442695, %v1042_v61  ;;  %v1028_v20 = vadd.f32 %v1967_v39, %v1010_v63  ;;  %v1196_v13 = vmul.f32 %v1480_v21, %v1292_v5  ;;  %v1133_v39 = vadd.s32 56, %v1779_v52 }
 0x362   :  { %v1482_v3 = vpop.eup %1481  ;;  %v1210_v17 = vadd.f32 %v1209_v8, %v1195_v12  ;;  %v1135_v32 = vadd.s32 72, %v1779_v52  ;;  %vm1152_vm10 = vcmp.eq.s32.totalorder %v1134_v23, %v2016_v29  ;;  %v1136_v40 = vadd.s32 80, %v1779_v52 }
 0x363   :  { %1497 = vpow2.f32 %v1071_v1  ;;  %v1044_v18 = vsub.f32 0.0, %v1028_v20  ;;  %v1088_v25 = vadd.f32 1.0, %v1482_v3  ;;  %vm1151_vm9 = vcmp.eq.s32.totalorder %v1133_v39, %v2016_v29 }
 0x364   :  { %v1484_v7 = vpop.eup %1483  ;;  %1499 = vrcp.f32 %v1087_v6  ;;  %v1211_v27 = vadd.f32 %v1210_v17, %v1196_v13  ;;  %v1295_v42 = vsel %vm1151_vm9, 1.0, %v1568_v34  ;;  %v1296_v51 = vsel %vm1152_vm10, 1.0, %v1568_v34 }
 0x365   :  { %v1486_v49 = vpop.eup %1485  ;;  %v1075_v16 = vmul.f32 1.442695, %v1044_v18  ;;  %v1197_v22 = vmul.f32 %v1484_v7, %v1293_v11  ;;  %vm1153_vm11 = vcmp.eq.s32.totalorder %v1135_v32, %v2016_v29  ;;  %vm1154_vm12 = vcmp.eq.s32.totalorder %v1136_v40, %v2016_v29 }
 0x366   :  { %v1086_v15 = vadd.f32 1.0, %v1486_v49  ;;  %v1137_v46 = vadd.s32 88, %v1779_v52  ;;  %v1138_v58 = vadd.s32 96, %v1779_v52  ;;  %v1297_v57 = vsel %vm1153_vm11, 1.0, %v1568_v34 }
 0x367   :  { %v1488_v24 = vpop.eup %1487  ;;  %v1212_v35 = vadd.f32 %v1211_v27, %v1197_v22  ;;  %v1298_v54 = vsel %vm1154_vm12, 1.0, %v1568_v34  ;;  %v1139_v59 = vadd.s32 104, %v1779_v52  ;;  %v1140_v61 = vadd.s32 112, %v1779_v52 }
 0x368   :  { %1501 = vrcp.f32 %v1086_v15  ;;  %v1490_v26 = vpop.eup %1489  ;;  %v1198_v37 = vmul.f32 %v1488_v24, %v1294_v30  ;;  %vm1155_vm13 = vcmp.eq.s32.totalorder %v1137_v46, %v2016_v29  ;;  %vm1156_vm14 = vcmp.eq.s32.totalorder %v1138_v58, %v2016_v29 }
 0x369   :  { %1503 = vpow2.f32 %v1075_v16  ;;  %v1091_v38 = vadd.f32 1.0, %v1490_v26  ;;  %v1299_v63 = vsel %vm1155_vm13, 1.0, %v1568_v34  ;;  %v1300_v0 = vsel %vm1156_vm14, 1.0, %v1568_v34 }
 0x36a   :  { %1505 = vrcp.f32 %v1088_v25  ;;  %v1213_v33 = vadd.f32 %v1212_v35, %v1198_v37  ;;  %vm1157_vm15 = vcmp.eq.s32.totalorder %v1139_v59, %v2016_v29  ;;  %v1141_v21 = vadd.s32 120, %v1779_v52 }
 0x36b   :  { %v1492_v28 = vpop.eup %1491  ;;  %vm1158_vm0 = vcmp.eq.s32.totalorder %v1140_v61, %v2016_v29  ;;  %v1301_v3 = vsel %vm1157_vm15, 1.0, %v1568_v34 }
 0x36c   :  { %v1089_v31 = vadd.f32 1.0, %v1492_v28  ;;  %v1494_v36 = vpop.eup %1493  ;;  %v1302_v7 = vsel %vm1158_vm0, 1.0, %v1568_v34  ;;  %vm1159_vm1 = vcmp.eq.s32.totalorder %v1141_v21, %v2016_v29 }
 0x36d   :  { %v1496_v41 = vpop.eup %1495  ;;  %v1199_v44 = vmul.f32 %v1494_v36, %v1295_v42  ;;  %v1303_v12 = vsel %vm1159_vm1, 1.0, %v1568_v34 }
 0x36e   :  { %1507 = vrcp.f32 %v1089_v31  ;;  %v1200_v45 = vmul.f32 %v1496_v41, %v1296_v51 }
 0x36f   :  { %1509 = vrcp.f32 %v1091_v38  ;;  %v1214_v48 = vadd.f32 %v1213_v33, %v1199_v44 }
 0x370   :  { %v1498_v9 = vpop.eup %1497 }
 0x371   :  { %v1090_v43 = vadd.f32 1.0, %v1498_v9  ;;  %v1500_v47 = vpop.eup %1499  ;;  %v1215_v10 = vadd.f32 %v1214_v48, %v1200_v45 }
 0x372   :  { %v1202_v19 = vmul.f32 %v1500_v47, %v1298_v54 }
 0x373   :  { %1511 = vrcp.f32 %v1090_v43 }
 0x375   :  { %v1502_v50 = vpop.eup %1501 }
 0x376   :  { %v1504_v53 = vpop.eup %1503  ;;  %v1201_v55 = vmul.f32 %v1502_v50, %v1297_v57 }
 0x377   :  { %v1092_v56 = vadd.f32 1.0, %v1504_v53  ;;  %v1506_v62 = vpop.eup %1505 }
 0x378   :  { %v1216_v60 = vadd.f32 %v1215_v10, %v1201_v55  ;;  %v1203_v2 = vmul.f32 %v1506_v62, %v1299_v63 }
 0x379   :  { %1513 = vrcp.f32 %v1092_v56 }
 0x37a   :  { %v1217_v1 = vadd.f32 %v1216_v60, %v1202_v19 }
 0x37b   :  { %v1508_v14 = vpop.eup %1507 }
 0x37c   :  { %v1204_v20 = vmul.f32 %v1508_v14, %v1300_v0  ;;  %v1510_v4 = vpop.eup %1509  ;;  %v1218_v5 = vadd.f32 %v1217_v1, %v1203_v2 }
 0x37d   :  { %v1206_v49 = vmul.f32 %v1510_v4, %v1302_v7 }
 0x37e   :  { %v1219_v18 = vadd.f32 %v1218_v5, %v1204_v20 }
 0x380   :  { %v1512_v6 = vpop.eup %1511 }
 0x381   :  { %v1205_v8 = vmul.f32 %v1512_v6, %v1301_v3 }
 0x383   :  { %v1220_v11 = vadd.f32 %v1219_v18, %v1205_v8 }
 0x385   :  { %v1221_v52 = vadd.f32 %v1220_v11, %v1206_v49 }
 0x386   :  { %v1514_v13 = vpop.eup %1513 }
 0x387   :  { %v1207_v15 = vmul.f32 %v1514_v13, %v1303_v12 }
 0x389   :  { %v1222_v16 = vadd.f32 %v1221_v52, %v1207_v15 }
 0x38b   :  { %v1223_v39 = vrot.slane %v1222_v16, 4 }
 0x38d   :  { %v1224_v17 = vadd.f32 %v1223_v39, %v1222_v16 }
 0x38f   :  { %v1225_v22 = vrot.slane %v1224_v17, 2 }
 0x391   :  { %v1226_v23 = vadd.f32 %v1225_v22, %v1224_v17 }
 0x393   :  { %v1227_v24 = vrot.slane %v1226_v23, 1 }
 0x395   :  { %v1228_v25 = vadd.f32 %v1227_v24, %v1226_v23 }
 0x397   :  { %1229 = vst [vmem:[#allocation8] sm:$0x1] %v1228_v25 }
 0x398   :  { %1550 = shalt.err (!%p1547_p0)
}
 0x399   :  { %1239 = dma.vmem_to_hbm [thread:$0]  %s1237_s14, 16, %s2119_s11, [#allocation4]  }
 0x39a   :  { %1563 = dma.done.wait [#allocation4], 16  }
 0x39b   :  { %1564 = vsyncadd [#allocation4], 4294967280 }
 0x39c   :  { %1243 = vsyncpa [#allocation4], 1 }
 0x39d   :  { %1244 = vsyncpa [#allocation5], 1 }
 0x39e   :  { %1245 = vsyncpa [#allocation7], 1 }

</bundles_post_ra>
